<compile_context>
chip_gen: v7x
topology: tpu7x:2x2x1
jax: 0.10.0
libtpu: 0.0.40
codegen_flags: <defaults>
</compile_context>

<pallas_src>
import functools

import jax
import jax.numpy as jnp
from jax.experimental import pallas as pl
from jax.experimental.pallas import tpu as pltpu
import numpy as np


def _sigmoid_tanh(v):
    # sigmoid(v) == 0.5 * tanh(0.5 * v) + 0.5  -> single EUP op per gate.
    return 0.5 * jnp.tanh(0.5 * v) + 0.5


def _lstm_kernel(x_ref, wih_ref, whh_ref, b_ref, wfc_ref, bfc_ref, y_ref, xproj_ref):
    # x_ref    : (T, 8, Dp)  f32   time-major, one 8-row batch block, D zero-padded
    # wih_ref  : (Dp, 4*Hp)  bf16  per-gate blocks [i|f|g|o], zero-padded
    # whh_ref  : (Hp, 4*Hp)  bf16
    # b_ref    : (1, 4*Hp)   f32   b_ih + b_hh, zero-padded
    # wfc_ref  : (Hp, Op)    f32
    # bfc_ref  : (1, Op)     f32
    # y_ref    : (8, Op)     f32   lane-dense padded output block
    # xproj_ref: (T*8, 4*Hp) f32   VMEM scratch for the hoisted projection
    T, Bb, Dp = x_ref.shape
    Hp = whh_ref.shape[0]

    # Hoisted input projection for ALL timesteps (off the serial chain): one
    # (T*8, Dp) @ (Dp, 4*Hp) bf16 matmul with f32 accumulation, bias folded in.
    # Stored to scratch so only one (8, 4*Hp) slice is live per recurrent step.
    x_all = x_ref[...].reshape(T * Bb, Dp).astype(jnp.bfloat16)
    xproj_ref[...] = (
        jnp.dot(x_all, wih_ref[...], preferred_element_type=jnp.float32) + b_ref[...]
    )

    whh = whh_ref[...]  # bf16, loop-invariant; streamed from VMEM into the MXU

    def step(t, carry):
        h, c = carry
        r0 = pl.multiple_of(t * Bb, 8)
        x_t = xproj_ref[pl.ds(r0, Bb), :]                       # (8, 4*Hp) f32
        gates = x_t + jnp.dot(h.astype(jnp.bfloat16), whh,
                              preferred_element_type=jnp.float32)
        # PyTorch LSTM gate order: i, f, g, o (static 128-aligned lane slices).
        i_g = _sigmoid_tanh(gates[:, 0 * Hp:1 * Hp])
        f_g = _sigmoid_tanh(gates[:, 1 * Hp:2 * Hp])
        g_g = jnp.tanh(gates[:, 2 * Hp:3 * Hp])
        o_g = _sigmoid_tanh(gates[:, 3 * Hp:4 * Hp])
        c = f_g * c + i_g * g_g
        h = o_g * jnp.tanh(c)
        return h, c

    h0 = jnp.zeros((Bb, Hp), jnp.float32)
    c0 = jnp.zeros((Bb, Hp), jnp.float32)
    h, _ = jax.lax.fori_loop(0, T, step, (h0, c0), unroll=True)

    # Dropout is identity in eval mode; fused fc on the last hidden state (f32).
    y = jnp.dot(h, wfc_ref[...], preferred_element_type=jnp.float32) + bfc_ref[...]
    y_ref[...] = y.astype(y_ref.dtype)


@functools.partial(jax.jit, static_argnames=("out_features",))
def lstm_network_forward(x, w_ih_p, w_hh_p, b_p, w_fc_p, b_fc_p, *, out_features):
    """x: (B, T, D) float32. Returns (B, out_features) float32."""
    B, T, D = x.shape
    Dp = w_ih_p.shape[0]
    Hp = w_hh_p.shape[0]
    Op = w_fc_p.shape[1]
    Bp = ((B + 7) // 8) * 8  # pad batch to full sublane groups

    # Minimal host-side glue (fused by XLA): time-major + zero pad batch->Bp, D->Dp.
    x_pad = jnp.zeros((T, Bp, Dp), jnp.float32).at[:, :B, :D].set(
        jnp.transpose(x, (1, 0, 2)))

    nb = Bp // 8
    y_pad = pl.pallas_call(
        _lstm_kernel,
        out_shape=jax.ShapeDtypeStruct((Bp, Op), jnp.float32),
        grid=(nb,),
        in_specs=[
            pl.BlockSpec((T, 8, Dp), lambda i: (0, i, 0)),
            pl.BlockSpec((Dp, 4 * Hp), lambda i: (0, 0)),
            pl.BlockSpec((Hp, 4 * Hp), lambda i: (0, 0)),
            pl.BlockSpec((1, 4 * Hp), lambda i: (0, 0)),
            pl.BlockSpec((Hp, Op), lambda i: (0, 0)),
            pl.BlockSpec((1, Op), lambda i: (0, 0)),
        ],
        out_specs=pl.BlockSpec((8, Op), lambda i: (i, 0)),
        scratch_shapes=[pltpu.VMEM((T * 8, 4 * Hp), jnp.float32)],
        compiler_params=pltpu.CompilerParams(dimension_semantics=("parallel",)),
    )(x_pad, w_ih_p, w_hh_p, b_p, w_fc_p, b_fc_p)

    return y_pad[:B, :out_features]


def init_params(key, input_size, hidden_size, output_size):
    """PyTorch-shaped raw f32 params (uniform(-1/sqrt(H), 1/sqrt(H))) plus padded,
    kernel-friendly layouts (right-multiply form, per-gate blocks padded to 128,
    LSTM weights in bf16)."""
    D, H, O = input_size, hidden_size, output_size
    Dp = ((D + 127) // 128) * 128
    Hp = ((H + 127) // 128) * 128
    Op = ((O + 127) // 128) * 128

    k = 1.0 / np.sqrt(H)
    keys = jax.random.split(key, 6)
    w_ih = jax.random.uniform(keys[0], (4 * H, D), jnp.float32, -k, k)   # weight_ih_l0
    w_hh = jax.random.uniform(keys[1], (4 * H, H), jnp.float32, -k, k)   # weight_hh_l0
    b_ih = jax.random.uniform(keys[2], (4 * H,), jnp.float32, -k, k)
    b_hh = jax.random.uniform(keys[3], (4 * H,), jnp.float32, -k, k)
    w_fc = jax.random.uniform(keys[4], (O, H), jnp.float32, -k, k)       # fc.weight
    b_fc = jax.random.uniform(keys[5], (O,), jnp.float32, -k, k)
    raw = (w_ih, w_hh, b_ih, b_hh, w_fc, b_fc)

    w_ih_np = np.asarray(w_ih)
    w_hh_np = np.asarray(w_hh)
    b_np = np.asarray(b_ih) + np.asarray(b_hh)
    w_fc_np = np.asarray(w_fc)
    b_fc_np = np.asarray(b_fc)

    # Zero padding is required for correctness of the padded lanes (g = tanh(0) = 0
    # keeps padded c/h lanes exactly zero).
    w_ih_p = np.zeros((Dp, 4 * Hp), np.float32)
    w_hh_p = np.zeros((Hp, 4 * Hp), np.float32)
    b_p = np.zeros((1, 4 * Hp), np.float32)
    for g in range(4):  # gate order i, f, g, o
        w_ih_p[:D, g * Hp:g * Hp + H] = w_ih_np[g * H:(g + 1) * H, :].T
        w_hh_p[:H, g * Hp:g * Hp + H] = w_hh_np[g * H:(g + 1) * H, :].T
        b_p[0, g * Hp:g * Hp + H] = b_np[g * H:(g + 1) * H]

    w_fc_p = np.zeros((Hp, Op), np.float32)
    w_fc_p[:H, :O] = w_fc_np.T
    b_fc_p = np.zeros((1, Op), np.float32)
    b_fc_p[0, :O] = b_fc_np

    padded = (
        jnp.asarray(w_ih_p, jnp.bfloat16),   # MXU operand (bf16 in, f32 accumulate)
        jnp.asarray(w_hh_p, jnp.bfloat16),   # MXU operand (bf16 in, f32 accumulate)
        jnp.asarray(b_p),                    # f32
        jnp.asarray(w_fc_p),                 # f32 (single off-chain matmul)
        jnp.asarray(b_fc_p),                 # f32
    )
    return padded, raw


def reference_forward(x, raw_params, *, mirror_kernel_math=False):
    """Pure-JAX reference of the PyTorch forward (eval mode).

    mirror_kernel_math=True reproduces the kernel's numerics exactly (bf16 matmul
    operands with f32 accumulation, tanh-form sigmoid); False is the full-f32
    PyTorch-equivalent math."""
    w_ih, w_hh, b_ih, b_hh, w_fc, b_fc = raw_params
    B, T, D = x.shape
    H = w_hh.shape[1]
    mm_dtype = jnp.bfloat16 if mirror_kernel_math else jnp.float32
    sig = _sigmoid_tanh if mirror_kernel_math else jax.nn.sigmoid

    w_ih_t = w_ih.T.astype(mm_dtype)
    w_hh_t = w_hh.T.astype(mm_dtype)
    bias = b_ih + b_hh

    def step(carry, x_t):
        h, c = carry
        gates = (jnp.dot(x_t.astype(mm_dtype), w_ih_t, preferred_element_type=jnp.float32)
                 + jnp.dot(h.astype(mm_dtype), w_hh_t, preferred_element_type=jnp.float32)
                 + bias)
        i = sig(gates[:, 0:H])
        f = sig(gates[:, H:2 * H])
        g = jnp.tanh(gates[:, 2 * H:3 * H])
        o = sig(gates[:, 3 * H:4 * H])
        c_new = f * c + i * g
        h_new = o * jnp.tanh(c_new)
        return (h_new, c_new), None

    h0 = jnp.zeros((B, H), jnp.float32)
    c0 = jnp.zeros((B, H), jnp.float32)
    (h_last, _), _ = jax.lax.scan(step, (h0, c0), jnp.transpose(x, (1, 0, 2)))
    return h_last @ w_fc.T + b_fc


if __name__ == "__main__":
    # Module defaults: input=15, hidden=100, output=3. Small batch/seq.
    B, T, D_IN, H, O = 2, 8, 15, 100, 3

    key = jax.random.PRNGKey(0)
    k_x, k_p = jax.random.split(key)
    x = jax.random.normal(k_x, (B, T, D_IN), jnp.float32)

    padded_params, raw_params = init_params(k_p, D_IN, H, O)

    y = lstm_network_forward(x, *padded_params, out_features=O)
    y = jax.block_until_ready(y)

    # (1) Exact-math check: JAX reference mirroring the kernel's bf16-operand /
    #     f32-accumulate matmuls and tanh-form sigmoid -> tight tolerance.
    y_km = reference_forward(x, raw_params, mirror_kernel_math=True)
    np.testing.assert_allclose(np.asarray(y), np.asarray(y_km), rtol=1e-3, atol=1e-4)

    # (2) Semantics check vs. the full-f32 PyTorch-equivalent forward; tolerance
    #     reflects bf16 matmul operands through the 8-step recurrence.
    y_f32 = reference_forward(x, raw_params, mirror_kernel_math=False)
    np.testing.assert_allclose(np.asarray(y), np.asarray(y_f32), rtol=1e-1, atol=5e-2)

    print("KERNEL_OK")
</pallas_src>

<mosaic_0001>
module attributes {stable_mosaic.version = 11 : i64} {
  func.func @_lstm_kernel(%arg0: i32, %arg1: memref<8x8x128xf32, #tpu.memory_space<vmem>>, %arg2: memref<128x512xbf16, #tpu.memory_space<vmem>>, %arg3: memref<128x512xbf16, #tpu.memory_space<vmem>>, %arg4: memref<1x512xf32, #tpu.memory_space<vmem>>, %arg5: memref<128x128xf32, #tpu.memory_space<vmem>>, %arg6: memref<1x128xf32, #tpu.memory_space<vmem>>, %arg7: memref<8x128xf32, #tpu.memory_space<vmem>>, %arg8: memref<64x512xf32, #tpu.memory_space<vmem>>) attributes {dimension_semantics = [#tpu.dimension_semantics<parallel>], iteration_bounds = array<i64: 1>, scalar_prefetch = 0 : i64, scratch_operands = 1 : i64, tpu.core_type = #tpu.core_type<tc>, window_params = [{transform_indices = @transform_0, window_bounds = array<i64: 8, 8, 128>}, {pipeline_mode = #tpu.pipeline_mode<synchronous>, transform_indices = @transform_1, window_bounds = array<i64: 128, 512>}, {pipeline_mode = #tpu.pipeline_mode<synchronous>, transform_indices = @transform_2, window_bounds = array<i64: 128, 512>}, {pipeline_mode = #tpu.pipeline_mode<synchronous>, transform_indices = @transform_3, window_bounds = array<i64: 1, 512>}, {pipeline_mode = #tpu.pipeline_mode<synchronous>, transform_indices = @transform_4, window_bounds = array<i64: 128, 128>}, {pipeline_mode = #tpu.pipeline_mode<synchronous>, transform_indices = @transform_5, window_bounds = array<i64: 1, 128>}, {transform_indices = @transform_6, window_bounds = array<i64: 8, 128>}]} {
    %c0 = arith.constant 0 : index
    %c0_0 = arith.constant 0 : index
    %c0_1 = arith.constant 0 : index
    %0 = vector.load %arg1[%c0, %c0_0, %c0_1] : memref<8x8x128xf32, #tpu.memory_space<vmem>>, vector<8x8x128xf32>
    %1 = vector.shape_cast %0 : vector<8x8x128xf32> to vector<64x128xf32>
    %2 = arith.truncf %1 : vector<64x128xf32> to vector<64x128xbf16>
    %c0_2 = arith.constant 0 : index
    %c0_3 = arith.constant 0 : index
    %3 = vector.load %arg2[%c0_2, %c0_3] : memref<128x512xbf16, #tpu.memory_space<vmem>>, vector<128x512xbf16>
    %cst = arith.constant dense<0.000000e+00> : vector<64x512xf32>
    %4 = tpu.matmul %2, %3, %cst {dimension_numbers = #tpu.dot_dimension_numbers<[1], [0], [0], [1], [0, 0, 1, 1], [], []>} : vector<64x128xbf16>, vector<128x512xbf16>, vector<64x512xf32> -> vector<64x512xf32>
    %c0_4 = arith.constant 0 : index
    %c0_5 = arith.constant 0 : index
    %5 = vector.load %arg4[%c0_4, %c0_5] : memref<1x512xf32, #tpu.memory_space<vmem>>, vector<1x512xf32>
    %6 = vector.broadcast %5 : vector<1x512xf32> to vector<64x512xf32>
    %7 = arith.addf %4, %6 : vector<64x512xf32>
    %c0_6 = arith.constant 0 : index
    %c0_7 = arith.constant 0 : index
    %8 = vector.load %arg8[%c0_6, %c0_7] : memref<64x512xf32, #tpu.memory_space<vmem>>, vector<64x512xf32>
    tpu.vector_store %arg8[%c0_6, %c0_7], %7 {strides = array<i32>} : memref<64x512xf32, #tpu.memory_space<vmem>>, vector<64x512xf32>,
    %c0_8 = arith.constant 0 : index
    %c0_9 = arith.constant 0 : index
    %9 = vector.load %arg3[%c0_8, %c0_9] : memref<128x512xbf16, #tpu.memory_space<vmem>>, vector<128x512xbf16>
    %cst_10 = arith.constant 0.000000e+00 : f32
    %10 = vector.broadcast %cst_10 : f32 to vector<8x128xf32>
    %cst_11 = arith.constant 0.000000e+00 : f32
    %11 = vector.broadcast %cst_11 : f32 to vector<8x128xf32>
    %c0_i32 = arith.constant 0 : i32
    %c8_i32 = arith.constant 8 : i32
    %12 = arith.muli %c0_i32, %c8_i32 : i32
    %13 = tpu.assume_multiple %12, 8 : i32
    %14 = arith.index_cast %13 : i32 to index
    %c0_12 = arith.constant 0 : index
    %15 = vector.load %arg8[%14, %c0_12] : memref<64x512xf32, #tpu.memory_space<vmem>>, vector<8x512xf32>
    %16 = arith.truncf %10 : vector<8x128xf32> to vector<8x128xbf16>
    %cst_13 = arith.constant dense<0.000000e+00> : vector<8x512xf32>
    %17 = tpu.matmul %16, %9, %cst_13 {dimension_numbers = #tpu.dot_dimension_numbers<[1], [0], [0], [1], [0, 0, 1, 1], [], []>} : vector<8x128xbf16>, vector<128x512xbf16>, vector<8x512xf32> -> vector<8x512xf32>
    %18 = arith.addf %15, %17 : vector<8x512xf32>
    %19 = vector.extract_strided_slice %18 {offsets = [0, 0], sizes = [8, 128], strides = [1, 1]} : vector<8x512xf32> to vector<8x128xf32>
    %cst_14 = arith.constant 5.000000e-01 : f32
    %20 = vector.broadcast %cst_14 : f32 to vector<8x128xf32>
    %21 = arith.mulf %20, %19 : vector<8x128xf32>
    %22 = math.tanh %21 : vector<8x128xf32>
    %cst_15 = arith.constant 5.000000e-01 : f32
    %23 = vector.broadcast %cst_15 : f32 to vector<8x128xf32>
    %24 = arith.mulf %23, %22 : vector<8x128xf32>
    %cst_16 = arith.constant 5.000000e-01 : f32
    %25 = vector.broadcast %cst_16 : f32 to vector<8x128xf32>
    %26 = arith.addf %24, %25 : vector<8x128xf32>
    %27 = vector.extract_strided_slice %18 {offsets = [0, 128], sizes = [8, 128], strides = [1, 1]} : vector<8x512xf32> to vector<8x128xf32>
    %cst_17 = arith.constant 5.000000e-01 : f32
    %28 = vector.broadcast %cst_17 : f32 to vector<8x128xf32>
    %29 = arith.mulf %28, %27 : vector<8x128xf32>
    %30 = math.tanh %29 : vector<8x128xf32>
    %cst_18 = arith.constant 5.000000e-01 : f32
    %31 = vector.broadcast %cst_18 : f32 to vector<8x128xf32>
    %32 = arith.mulf %31, %30 : vector<8x128xf32>
    %cst_19 = arith.constant 5.000000e-01 : f32
    %33 = vector.broadcast %cst_19 : f32 to vector<8x128xf32>
    %34 = arith.addf %32, %33 : vector<8x128xf32>
    %35 = vector.extract_strided_slice %18 {offsets = [0, 256], sizes = [8, 128], strides = [1, 1]} : vector<8x512xf32> to vector<8x128xf32>
    %36 = math.tanh %35 : vector<8x128xf32>
    %37 = vector.extract_strided_slice %18 {offsets = [0, 384], sizes = [8, 128], strides = [1, 1]} : vector<8x512xf32> to vector<8x128xf32>
    %cst_20 = arith.constant 5.000000e-01 : f32
    %38 = vector.broadcast %cst_20 : f32 to vector<8x128xf32>
    %39 = arith.mulf %38, %37 : vector<8x128xf32>
    %40 = math.tanh %39 : vector<8x128xf32>
    %cst_21 = arith.constant 5.000000e-01 : f32
    %41 = vector.broadcast %cst_21 : f32 to vector<8x128xf32>
    %42 = arith.mulf %41, %40 : vector<8x128xf32>
    %cst_22 = arith.constant 5.000000e-01 : f32
    %43 = vector.broadcast %cst_22 : f32 to vector<8x128xf32>
    %44 = arith.addf %42, %43 : vector<8x128xf32>
    %45 = arith.mulf %34, %11 : vector<8x128xf32>
    %46 = arith.mulf %26, %36 : vector<8x128xf32>
    %47 = arith.addf %45, %46 : vector<8x128xf32>
    %48 = math.tanh %47 : vector<8x128xf32>
    %49 = arith.mulf %44, %48 : vector<8x128xf32>
    %c1_i32 = arith.constant 1 : i32
    %c8_i32_23 = arith.constant 8 : i32
    %50 = arith.muli %c1_i32, %c8_i32_23 : i32
    %51 = tpu.assume_multiple %50, 8 : i32
    %52 = arith.index_cast %51 : i32 to index
    %c0_24 = arith.constant 0 : index
    %53 = vector.load %arg8[%52, %c0_24] : memref<64x512xf32, #tpu.memory_space<vmem>>, vector<8x512xf32>
    %54 = arith.truncf %49 : vector<8x128xf32> to vector<8x128xbf16>
    %cst_25 = arith.constant dense<0.000000e+00> : vector<8x512xf32>
    %55 = tpu.matmul %54, %9, %cst_25 {dimension_numbers = #tpu.dot_dimension_numbers<[1], [0], [0], [1], [0, 0, 1, 1], [], []>} : vector<8x128xbf16>, vector<128x512xbf16>, vector<8x512xf32> -> vector<8x512xf32>
    %56 = arith.addf %53, %55 : vector<8x512xf32>
    %57 = vector.extract_strided_slice %56 {offsets = [0, 0], sizes = [8, 128], strides = [1, 1]} : vector<8x512xf32> to vector<8x128xf32>
    %cst_26 = arith.constant 5.000000e-01 : f32
    %58 = vector.broadcast %cst_26 : f32 to vector<8x128xf32>
    %59 = arith.mulf %58, %57 : vector<8x128xf32>
    %60 = math.tanh %59 : vector<8x128xf32>
    %cst_27 = arith.constant 5.000000e-01 : f32
    %61 = vector.broadcast %cst_27 : f32 to vector<8x128xf32>
    %62 = arith.mulf %61, %60 : vector<8x128xf32>
    %cst_28 = arith.constant 5.000000e-01 : f32
    %63 = vector.broadcast %cst_28 : f32 to vector<8x128xf32>
    %64 = arith.addf %62, %63 : vector<8x128xf32>
    %65 = vector.extract_strided_slice %56 {offsets = [0, 128], sizes = [8, 128], strides = [1, 1]} : vector<8x512xf32> to vector<8x128xf32>
    %cst_29 = arith.constant 5.000000e-01 : f32
    %66 = vector.broadcast %cst_29 : f32 to vector<8x128xf32>
    %67 = arith.mulf %66, %65 : vector<8x128xf32>
    %68 = math.tanh %67 : vector<8x128xf32>
    %cst_30 = arith.constant 5.000000e-01 : f32
    %69 = vector.broadcast %cst_30 : f32 to vector<8x128xf32>
    %70 = arith.mulf %69, %68 : vector<8x128xf32>
    %cst_31 = arith.constant 5.000000e-01 : f32
    %71 = vector.broadcast %cst_31 : f32 to vector<8x128xf32>
    %72 = arith.addf %70, %71 : vector<8x128xf32>
    %73 = vector.extract_strided_slice %56 {offsets = [0, 256], sizes = [8, 128], strides = [1, 1]} : vector<8x512xf32> to vector<8x128xf32>
    %74 = math.tanh %73 : vector<8x128xf32>
    %75 = vector.extract_strided_slice %56 {offsets = [0, 384], sizes = [8, 128], strides = [1, 1]} : vector<8x512xf32> to vector<8x128xf32>
    %cst_32 = arith.constant 5.000000e-01 : f32
    %76 = vector.broadcast %cst_32 : f32 to vector<8x128xf32>
    %77 = arith.mulf %76, %75 : vector<8x128xf32>
    %78 = math.tanh %77 : vector<8x128xf32>
    %cst_33 = arith.constant 5.000000e-01 : f32
    %79 = vector.broadcast %cst_33 : f32 to vector<8x128xf32>
    %80 = arith.mulf %79, %78 : vector<8x128xf32>
    %cst_34 = arith.constant 5.000000e-01 : f32
    %81 = vector.broadcast %cst_34 : f32 to vector<8x128xf32>
    %82 = arith.addf %80, %81 : vector<8x128xf32>
    %83 = arith.mulf %72, %47 : vector<8x128xf32>
    %84 = arith.mulf %64, %74 : vector<8x128xf32>
    %85 = arith.addf %83, %84 : vector<8x128xf32>
    %86 = math.tanh %85 : vector<8x128xf32>
    %87 = arith.mulf %82, %86 : vector<8x128xf32>
    %c2_i32 = arith.constant 2 : i32
    %c8_i32_35 = arith.constant 8 : i32
    %88 = arith.muli %c2_i32, %c8_i32_35 : i32
    %89 = tpu.assume_multiple %88, 8 : i32
    %90 = arith.index_cast %89 : i32 to index
    %c0_36 = arith.constant 0 : index
    %91 = vector.load %arg8[%90, %c0_36] : memref<64x512xf32, #tpu.memory_space<vmem>>, vector<8x512xf32>
    %92 = arith.truncf %87 : vector<8x128xf32> to vector<8x128xbf16>
    %cst_37 = arith.constant dense<0.000000e+00> : vector<8x512xf32>
    %93 = tpu.matmul %92, %9, %cst_37 {dimension_numbers = #tpu.dot_dimension_numbers<[1], [0], [0], [1], [0, 0, 1, 1], [], []>} : vector<8x128xbf16>, vector<128x512xbf16>, vector<8x512xf32> -> vector<8x512xf32>
    %94 = arith.addf %91, %93 : vector<8x512xf32>
    %95 = vector.extract_strided_slice %94 {offsets = [0, 0], sizes = [8, 128], strides = [1, 1]} : vector<8x512xf32> to vector<8x128xf32>
    %cst_38 = arith.constant 5.000000e-01 : f32
    %96 = vector.broadcast %cst_38 : f32 to vector<8x128xf32>
    %97 = arith.mulf %96, %95 : vector<8x128xf32>
    %98 = math.tanh %97 : vector<8x128xf32>
    %cst_39 = arith.constant 5.000000e-01 : f32
    %99 = vector.broadcast %cst_39 : f32 to vector<8x128xf32>
    %100 = arith.mulf %99, %98 : vector<8x128xf32>
    %cst_40 = arith.constant 5.000000e-01 : f32
    %101 = vector.broadcast %cst_40 : f32 to vector<8x128xf32>
    %102 = arith.addf %100, %101 : vector<8x128xf32>
    %103 = vector.extract_strided_slice %94 {offsets = [0, 128], sizes = [8, 128], strides = [1, 1]} : vector<8x512xf32> to vector<8x128xf32>
    %cst_41 = arith.constant 5.000000e-01 : f32
    %104 = vector.broadcast %cst_41 : f32 to vector<8x128xf32>
    %105 = arith.mulf %104, %103 : vector<8x128xf32>
    %106 = math.tanh %105 : vector<8x128xf32>
    %cst_42 = arith.constant 5.000000e-01 : f32
    %107 = vector.broadcast %cst_42 : f32 to vector<8x128xf32>
    %108 = arith.mulf %107, %106 : vector<8x128xf32>
    %cst_43 = arith.constant 5.000000e-01 : f32
    %109 = vector.broadcast %cst_43 : f32 to vector<8x128xf32>
    %110 = arith.addf %108, %109 : vector<8x128xf32>
    %111 = vector.extract_strided_slice %94 {offsets = [0, 256], sizes = [8, 128], strides = [1, 1]} : vector<8x512xf32> to vector<8x128xf32>
    %112 = math.tanh %111 : vector<8x128xf32>
    %113 = vector.extract_strided_slice %94 {offsets = [0, 384], sizes = [8, 128], strides = [1, 1]} : vector<8x512xf32> to vector<8x128xf32>
    %cst_44 = arith.constant 5.000000e-01 : f32
    %114 = vector.broadcast %cst_44 : f32 to vector<8x128xf32>
    %115 = arith.mulf %114, %113 : vector<8x128xf32>
    %116 = math.tanh %115 : vector<8x128xf32>
    %cst_45 = arith.constant 5.000000e-01 : f32
    %117 = vector.broadcast %cst_45 : f32 to vector<8x128xf32>
    %118 = arith.mulf %117, %116 : vector<8x128xf32>
    %cst_46 = arith.constant 5.000000e-01 : f32
    %119 = vector.broadcast %cst_46 : f32 to vector<8x128xf32>
    %120 = arith.addf %118, %119 : vector<8x128xf32>
    %121 = arith.mulf %110, %85 : vector<8x128xf32>
    %122 = arith.mulf %102, %112 : vector<8x128xf32>
    %123 = arith.addf %121, %122 : vector<8x128xf32>
    %124 = math.tanh %123 : vector<8x128xf32>
    %125 = arith.mulf %120, %124 : vector<8x128xf32>
    %c3_i32 = arith.constant 3 : i32
    %c8_i32_47 = arith.constant 8 : i32
    %126 = arith.muli %c3_i32, %c8_i32_47 : i32
    %127 = tpu.assume_multiple %126, 8 : i32
    %128 = arith.index_cast %127 : i32 to index
    %c0_48 = arith.constant 0 : index
    %129 = vector.load %arg8[%128, %c0_48] : memref<64x512xf32, #tpu.memory_space<vmem>>, vector<8x512xf32>
    %130 = arith.truncf %125 : vector<8x128xf32> to vector<8x128xbf16>
    %cst_49 = arith.constant dense<0.000000e+00> : vector<8x512xf32>
    %131 = tpu.matmul %130, %9, %cst_49 {dimension_numbers = #tpu.dot_dimension_numbers<[1], [0], [0], [1], [0, 0, 1, 1], [], []>} : vector<8x128xbf16>, vector<128x512xbf16>, vector<8x512xf32> -> vector<8x512xf32>
    %132 = arith.addf %129, %131 : vector<8x512xf32>
    %133 = vector.extract_strided_slice %132 {offsets = [0, 0], sizes = [8, 128], strides = [1, 1]} : vector<8x512xf32> to vector<8x128xf32>
    %cst_50 = arith.constant 5.000000e-01 : f32
    %134 = vector.broadcast %cst_50 : f32 to vector<8x128xf32>
    %135 = arith.mulf %134, %133 : vector<8x128xf32>
    %136 = math.tanh %135 : vector<8x128xf32>
    %cst_51 = arith.constant 5.000000e-01 : f32
    %137 = vector.broadcast %cst_51 : f32 to vector<8x128xf32>
    %138 = arith.mulf %137, %136 : vector<8x128xf32>
    %cst_52 = arith.constant 5.000000e-01 : f32
    %139 = vector.broadcast %cst_52 : f32 to vector<8x128xf32>
    %140 = arith.addf %138, %139 : vector<8x128xf32>
    %141 = vector.extract_strided_slice %132 {offsets = [0, 128], sizes = [8, 128], strides = [1, 1]} : vector<8x512xf32> to vector<8x128xf32>
    %cst_53 = arith.constant 5.000000e-01 : f32
    %142 = vector.broadcast %cst_53 : f32 to vector<8x128xf32>
    %143 = arith.mulf %142, %141 : vector<8x128xf32>
    %144 = math.tanh %143 : vector<8x128xf32>
    %cst_54 = arith.constant 5.000000e-01 : f32
    %145 = vector.broadcast %cst_54 : f32 to vector<8x128xf32>
    %146 = arith.mulf %145, %144 : vector<8x128xf32>
    %cst_55 = arith.constant 5.000000e-01 : f32
    %147 = vector.broadcast %cst_55 : f32 to vector<8x128xf32>
    %148 = arith.addf %146, %147 : vector<8x128xf32>
    %149 = vector.extract_strided_slice %132 {offsets = [0, 256], sizes = [8, 128], strides = [1, 1]} : vector<8x512xf32> to vector<8x128xf32>
    %150 = math.tanh %149 : vector<8x128xf32>
    %151 = vector.extract_strided_slice %132 {offsets = [0, 384], sizes = [8, 128], strides = [1, 1]} : vector<8x512xf32> to vector<8x128xf32>
    %cst_56 = arith.constant 5.000000e-01 : f32
    %152 = vector.broadcast %cst_56 : f32 to vector<8x128xf32>
    %153 = arith.mulf %152, %151 : vector<8x128xf32>
    %154 = math.tanh %153 : vector<8x128xf32>
    %cst_57 = arith.constant 5.000000e-01 : f32
    %155 = vector.broadcast %cst_57 : f32 to vector<8x128xf32>
    %156 = arith.mulf %155, %154 : vector<8x128xf32>
    %cst_58 = arith.constant 5.000000e-01 : f32
    %157 = vector.broadcast %cst_58 : f32 to vector<8x128xf32>
    %158 = arith.addf %156, %157 : vector<8x128xf32>
    %159 = arith.mulf %148, %123 : vector<8x128xf32>
    %160 = arith.mulf %140, %150 : vector<8x128xf32>
    %161 = arith.addf %159, %160 : vector<8x128xf32>
    %162 = math.tanh %161 : vector<8x128xf32>
    %163 = arith.mulf %158, %162 : vector<8x128xf32>
    %c4_i32 = arith.constant 4 : i32
    %c8_i32_59 = arith.constant 8 : i32
    %164 = arith.muli %c4_i32, %c8_i32_59 : i32
    %165 = tpu.assume_multiple %164, 8 : i32
    %166 = arith.index_cast %165 : i32 to index
    %c0_60 = arith.constant 0 : index
    %167 = vector.load %arg8[%166, %c0_60] : memref<64x512xf32, #tpu.memory_space<vmem>>, vector<8x512xf32>
    %168 = arith.truncf %163 : vector<8x128xf32> to vector<8x128xbf16>
    %cst_61 = arith.constant dense<0.000000e+00> : vector<8x512xf32>
    %169 = tpu.matmul %168, %9, %cst_61 {dimension_numbers = #tpu.dot_dimension_numbers<[1], [0], [0], [1], [0, 0, 1, 1], [], []>} : vector<8x128xbf16>, vector<128x512xbf16>, vector<8x512xf32> -> vector<8x512xf32>
    %170 = arith.addf %167, %169 : vector<8x512xf32>
    %171 = vector.extract_strided_slice %170 {offsets = [0, 0], sizes = [8, 128], strides = [1, 1]} : vector<8x512xf32> to vector<8x128xf32>
    %cst_62 = arith.constant 5.000000e-01 : f32
    %172 = vector.broadcast %cst_62 : f32 to vector<8x128xf32>
    %173 = arith.mulf %172, %171 : vector<8x128xf32>
    %174 = math.tanh %173 : vector<8x128xf32>
    %cst_63 = arith.constant 5.000000e-01 : f32
    %175 = vector.broadcast %cst_63 : f32 to vector<8x128xf32>
    %176 = arith.mulf %175, %174 : vector<8x128xf32>
    %cst_64 = arith.constant 5.000000e-01 : f32
    %177 = vector.broadcast %cst_64 : f32 to vector<8x128xf32>
    %178 = arith.addf %176, %177 : vector<8x128xf32>
    %179 = vector.extract_strided_slice %170 {offsets = [0, 128], sizes = [8, 128], strides = [1, 1]} : vector<8x512xf32> to vector<8x128xf32>
    %cst_65 = arith.constant 5.000000e-01 : f32
    %180 = vector.broadcast %cst_65 : f32 to vector<8x128xf32>
    %181 = arith.mulf %180, %179 : vector<8x128xf32>
    %182 = math.tanh %181 : vector<8x128xf32>
    %cst_66 = arith.constant 5.000000e-01 : f32
    %183 = vector.broadcast %cst_66 : f32 to vector<8x128xf32>
    %184 = arith.mulf %183, %182 : vector<8x128xf32>
    %cst_67 = arith.constant 5.000000e-01 : f32
    %185 = vector.broadcast %cst_67 : f32 to vector<8x128xf32>
    %186 = arith.addf %184, %185 : vector<8x128xf32>
    %187 = vector.extract_strided_slice %170 {offsets = [0, 256], sizes = [8, 128], strides = [1, 1]} : vector<8x512xf32> to vector<8x128xf32>
    %188 = math.tanh %187 : vector<8x128xf32>
    %189 = vector.extract_strided_slice %170 {offsets = [0, 384], sizes = [8, 128], strides = [1, 1]} : vector<8x512xf32> to vector<8x128xf32>
    %cst_68 = arith.constant 5.000000e-01 : f32
    %190 = vector.broadcast %cst_68 : f32 to vector<8x128xf32>
    %191 = arith.mulf %190, %189 : vector<8x128xf32>
    %192 = math.tanh %191 : vector<8x128xf32>
    %cst_69 = arith.constant 5.000000e-01 : f32
    %193 = vector.broadcast %cst_69 : f32 to vector<8x128xf32>
    %194 = arith.mulf %193, %192 : vector<8x128xf32>
    %cst_70 = arith.constant 5.000000e-01 : f32
    %195 = vector.broadcast %cst_70 : f32 to vector<8x128xf32>
    %196 = arith.addf %194, %195 : vector<8x128xf32>
    %197 = arith.mulf %186, %161 : vector<8x128xf32>
    %198 = arith.mulf %178, %188 : vector<8x128xf32>
    %199 = arith.addf %197, %198 : vector<8x128xf32>
    %200 = math.tanh %199 : vector<8x128xf32>
    %201 = arith.mulf %196, %200 : vector<8x128xf32>
    %c5_i32 = arith.constant 5 : i32
    %c8_i32_71 = arith.constant 8 : i32
    %202 = arith.muli %c5_i32, %c8_i32_71 : i32
    %203 = tpu.assume_multiple %202, 8 : i32
    %204 = arith.index_cast %203 : i32 to index
    %c0_72 = arith.constant 0 : index
    %205 = vector.load %arg8[%204, %c0_72] : memref<64x512xf32, #tpu.memory_space<vmem>>, vector<8x512xf32>
    %206 = arith.truncf %201 : vector<8x128xf32> to vector<8x128xbf16>
    %cst_73 = arith.constant dense<0.000000e+00> : vector<8x512xf32>
    %207 = tpu.matmul %206, %9, %cst_73 {dimension_numbers = #tpu.dot_dimension_numbers<[1], [0], [0], [1], [0, 0, 1, 1], [], []>} : vector<8x128xbf16>, vector<128x512xbf16>, vector<8x512xf32> -> vector<8x512xf32>
    %208 = arith.addf %205, %207 : vector<8x512xf32>
    %209 = vector.extract_strided_slice %208 {offsets = [0, 0], sizes = [8, 128], strides = [1, 1]} : vector<8x512xf32> to vector<8x128xf32>
    %cst_74 = arith.constant 5.000000e-01 : f32
    %210 = vector.broadcast %cst_74 : f32 to vector<8x128xf32>
    %211 = arith.mulf %210, %209 : vector<8x128xf32>
    %212 = math.tanh %211 : vector<8x128xf32>
    %cst_75 = arith.constant 5.000000e-01 : f32
    %213 = vector.broadcast %cst_75 : f32 to vector<8x128xf32>
    %214 = arith.mulf %213, %212 : vector<8x128xf32>
    %cst_76 = arith.constant 5.000000e-01 : f32
    %215 = vector.broadcast %cst_76 : f32 to vector<8x128xf32>
    %216 = arith.addf %214, %215 : vector<8x128xf32>
    %217 = vector.extract_strided_slice %208 {offsets = [0, 128], sizes = [8, 128], strides = [1, 1]} : vector<8x512xf32> to vector<8x128xf32>
    %cst_77 = arith.constant 5.000000e-01 : f32
    %218 = vector.broadcast %cst_77 : f32 to vector<8x128xf32>
    %219 = arith.mulf %218, %217 : vector<8x128xf32>
    %220 = math.tanh %219 : vector<8x128xf32>
    %cst_78 = arith.constant 5.000000e-01 : f32
    %221 = vector.broadcast %cst_78 : f32 to vector<8x128xf32>
    %222 = arith.mulf %221, %220 : vector<8x128xf32>
    %cst_79 = arith.constant 5.000000e-01 : f32
    %223 = vector.broadcast %cst_79 : f32 to vector<8x128xf32>
    %224 = arith.addf %222, %223 : vector<8x128xf32>
    %225 = vector.extract_strided_slice %208 {offsets = [0, 256], sizes = [8, 128], strides = [1, 1]} : vector<8x512xf32> to vector<8x128xf32>
    %226 = math.tanh %225 : vector<8x128xf32>
    %227 = vector.extract_strided_slice %208 {offsets = [0, 384], sizes = [8, 128], strides = [1, 1]} : vector<8x512xf32> to vector<8x128xf32>
    %cst_80 = arith.constant 5.000000e-01 : f32
    %228 = vector.broadcast %cst_80 : f32 to vector<8x128xf32>
    %229 = arith.mulf %228, %227 : vector<8x128xf32>
    %230 = math.tanh %229 : vector<8x128xf32>
    %cst_81 = arith.constant 5.000000e-01 : f32
    %231 = vector.broadcast %cst_81 : f32 to vector<8x128xf32>
    %232 = arith.mulf %231, %230 : vector<8x128xf32>
    %cst_82 = arith.constant 5.000000e-01 : f32
    %233 = vector.broadcast %cst_82 : f32 to vector<8x128xf32>
    %234 = arith.addf %232, %233 : vector<8x128xf32>
    %235 = arith.mulf %224, %199 : vector<8x128xf32>
    %236 = arith.mulf %216, %226 : vector<8x128xf32>
    %237 = arith.addf %235, %236 : vector<8x128xf32>
    %238 = math.tanh %237 : vector<8x128xf32>
    %239 = arith.mulf %234, %238 : vector<8x128xf32>
    %c6_i32 = arith.constant 6 : i32
    %c8_i32_83 = arith.constant 8 : i32
    %240 = arith.muli %c6_i32, %c8_i32_83 : i32
    %241 = tpu.assume_multiple %240, 8 : i32
    %242 = arith.index_cast %241 : i32 to index
    %c0_84 = arith.constant 0 : index
    %243 = vector.load %arg8[%242, %c0_84] : memref<64x512xf32, #tpu.memory_space<vmem>>, vector<8x512xf32>
    %244 = arith.truncf %239 : vector<8x128xf32> to vector<8x128xbf16>
    %cst_85 = arith.constant dense<0.000000e+00> : vector<8x512xf32>
    %245 = tpu.matmul %244, %9, %cst_85 {dimension_numbers = #tpu.dot_dimension_numbers<[1], [0], [0], [1], [0, 0, 1, 1], [], []>} : vector<8x128xbf16>, vector<128x512xbf16>, vector<8x512xf32> -> vector<8x512xf32>
    %246 = arith.addf %243, %245 : vector<8x512xf32>
    %247 = vector.extract_strided_slice %246 {offsets = [0, 0], sizes = [8, 128], strides = [1, 1]} : vector<8x512xf32> to vector<8x128xf32>
    %cst_86 = arith.constant 5.000000e-01 : f32
    %248 = vector.broadcast %cst_86 : f32 to vector<8x128xf32>
    %249 = arith.mulf %248, %247 : vector<8x128xf32>
    %250 = math.tanh %249 : vector<8x128xf32>
    %cst_87 = arith.constant 5.000000e-01 : f32
    %251 = vector.broadcast %cst_87 : f32 to vector<8x128xf32>
    %252 = arith.mulf %251, %250 : vector<8x128xf32>
    %cst_88 = arith.constant 5.000000e-01 : f32
    %253 = vector.broadcast %cst_88 : f32 to vector<8x128xf32>
    %254 = arith.addf %252, %253 : vector<8x128xf32>
    %255 = vector.extract_strided_slice %246 {offsets = [0, 128], sizes = [8, 128], strides = [1, 1]} : vector<8x512xf32> to vector<8x128xf32>
    %cst_89 = arith.constant 5.000000e-01 : f32
    %256 = vector.broadcast %cst_89 : f32 to vector<8x128xf32>
    %257 = arith.mulf %256, %255 : vector<8x128xf32>
    %258 = math.tanh %257 : vector<8x128xf32>
    %cst_90 = arith.constant 5.000000e-01 : f32
    %259 = vector.broadcast %cst_90 : f32 to vector<8x128xf32>
    %260 = arith.mulf %259, %258 : vector<8x128xf32>
    %cst_91 = arith.constant 5.000000e-01 : f32
    %261 = vector.broadcast %cst_91 : f32 to vector<8x128xf32>
    %262 = arith.addf %260, %261 : vector<8x128xf32>
    %263 = vector.extract_strided_slice %246 {offsets = [0, 256], sizes = [8, 128], strides = [1, 1]} : vector<8x512xf32> to vector<8x128xf32>
    %264 = math.tanh %263 : vector<8x128xf32>
    %265 = vector.extract_strided_slice %246 {offsets = [0, 384], sizes = [8, 128], strides = [1, 1]} : vector<8x512xf32> to vector<8x128xf32>
    %cst_92 = arith.constant 5.000000e-01 : f32
    %266 = vector.broadcast %cst_92 : f32 to vector<8x128xf32>
    %267 = arith.mulf %266, %265 : vector<8x128xf32>
    %268 = math.tanh %267 : vector<8x128xf32>
    %cst_93 = arith.constant 5.000000e-01 : f32
    %269 = vector.broadcast %cst_93 : f32 to vector<8x128xf32>
    %270 = arith.mulf %269, %268 : vector<8x128xf32>
    %cst_94 = arith.constant 5.000000e-01 : f32
    %271 = vector.broadcast %cst_94 : f32 to vector<8x128xf32>
    %272 = arith.addf %270, %271 : vector<8x128xf32>
    %273 = arith.mulf %262, %237 : vector<8x128xf32>
    %274 = arith.mulf %254, %264 : vector<8x128xf32>
    %275 = arith.addf %273, %274 : vector<8x128xf32>
    %276 = math.tanh %275 : vector<8x128xf32>
    %277 = arith.mulf %272, %276 : vector<8x128xf32>
    %c7_i32 = arith.constant 7 : i32
    %c8_i32_95 = arith.constant 8 : i32
    %278 = arith.muli %c7_i32, %c8_i32_95 : i32
    %279 = tpu.assume_multiple %278, 8 : i32
    %280 = arith.index_cast %279 : i32 to index
    %c0_96 = arith.constant 0 : index
    %281 = vector.load %arg8[%280, %c0_96] : memref<64x512xf32, #tpu.memory_space<vmem>>, vector<8x512xf32>
    %282 = arith.truncf %277 : vector<8x128xf32> to vector<8x128xbf16>
    %cst_97 = arith.constant dense<0.000000e+00> : vector<8x512xf32>
    %283 = tpu.matmul %282, %9, %cst_97 {dimension_numbers = #tpu.dot_dimension_numbers<[1], [0], [0], [1], [0, 0, 1, 1], [], []>} : vector<8x128xbf16>, vector<128x512xbf16>, vector<8x512xf32> -> vector<8x512xf32>
    %284 = arith.addf %281, %283 : vector<8x512xf32>
    %285 = vector.extract_strided_slice %284 {offsets = [0, 0], sizes = [8, 128], strides = [1, 1]} : vector<8x512xf32> to vector<8x128xf32>
    %cst_98 = arith.constant 5.000000e-01 : f32
    %286 = vector.broadcast %cst_98 : f32 to vector<8x128xf32>
    %287 = arith.mulf %286, %285 : vector<8x128xf32>
    %288 = math.tanh %287 : vector<8x128xf32>
    %cst_99 = arith.constant 5.000000e-01 : f32
    %289 = vector.broadcast %cst_99 : f32 to vector<8x128xf32>
    %290 = arith.mulf %289, %288 : vector<8x128xf32>
    %cst_100 = arith.constant 5.000000e-01 : f32
    %291 = vector.broadcast %cst_100 : f32 to vector<8x128xf32>
    %292 = arith.addf %290, %291 : vector<8x128xf32>
    %293 = vector.extract_strided_slice %284 {offsets = [0, 128], sizes = [8, 128], strides = [1, 1]} : vector<8x512xf32> to vector<8x128xf32>
    %cst_101 = arith.constant 5.000000e-01 : f32
    %294 = vector.broadcast %cst_101 : f32 to vector<8x128xf32>
    %295 = arith.mulf %294, %293 : vector<8x128xf32>
    %296 = math.tanh %295 : vector<8x128xf32>
    %cst_102 = arith.constant 5.000000e-01 : f32
    %297 = vector.broadcast %cst_102 : f32 to vector<8x128xf32>
    %298 = arith.mulf %297, %296 : vector<8x128xf32>
    %cst_103 = arith.constant 5.000000e-01 : f32
    %299 = vector.broadcast %cst_103 : f32 to vector<8x128xf32>
    %300 = arith.addf %298, %299 : vector<8x128xf32>
    %301 = vector.extract_strided_slice %284 {offsets = [0, 256], sizes = [8, 128], strides = [1, 1]} : vector<8x512xf32> to vector<8x128xf32>
    %302 = math.tanh %301 : vector<8x128xf32>
    %303 = vector.extract_strided_slice %284 {offsets = [0, 384], sizes = [8, 128], strides = [1, 1]} : vector<8x512xf32> to vector<8x128xf32>
    %cst_104 = arith.constant 5.000000e-01 : f32
    %304 = vector.broadcast %cst_104 : f32 to vector<8x128xf32>
    %305 = arith.mulf %304, %303 : vector<8x128xf32>
    %306 = math.tanh %305 : vector<8x128xf32>
    %cst_105 = arith.constant 5.000000e-01 : f32
    %307 = vector.broadcast %cst_105 : f32 to vector<8x128xf32>
    %308 = arith.mulf %307, %306 : vector<8x128xf32>
    %cst_106 = arith.constant 5.000000e-01 : f32
    %309 = vector.broadcast %cst_106 : f32 to vector<8x128xf32>
    %310 = arith.addf %308, %309 : vector<8x128xf32>
    %311 = arith.mulf %300, %275 : vector<8x128xf32>
    %312 = arith.mulf %292, %302 : vector<8x128xf32>
    %313 = arith.addf %311, %312 : vector<8x128xf32>
    %314 = math.tanh %313 : vector<8x128xf32>
    %315 = arith.mulf %310, %314 : vector<8x128xf32>
    %c8_i32_107 = arith.constant 8 : i32
    %c0_108 = arith.constant 0 : index
    %c0_109 = arith.constant 0 : index
    %316 = vector.load %arg5[%c0_108, %c0_109] : memref<128x128xf32, #tpu.memory_space<vmem>>, vector<128x128xf32>
    %cst_110 = arith.constant dense<0.000000e+00> : vector<8x128xf32>
    %317 = tpu.matmul %315, %316, %cst_110 {dimension_numbers = #tpu.dot_dimension_numbers<[1], [0], [0], [1], [0, 0, 1, 1], [], []>} : vector<8x128xf32>, vector<128x128xf32>, vector<8x128xf32> -> vector<8x128xf32>
    %c0_111 = arith.constant 0 : index
    %c0_112 = arith.constant 0 : index
    %318 = vector.load %arg6[%c0_111, %c0_112] : memref<1x128xf32, #tpu.memory_space<vmem>>, vector<1x128xf32>
    %319 = vector.broadcast %318 : vector<1x128xf32> to vector<8x128xf32>
    %320 = arith.addf %317, %319 : vector<8x128xf32>
    %c0_113 = arith.constant 0 : index
    %c0_114 = arith.constant 0 : index
    %321 = vector.load %arg7[%c0_113, %c0_114] : memref<8x128xf32, #tpu.memory_space<vmem>>, vector<8x128xf32>
    tpu.vector_store %arg7[%c0_113, %c0_114], %320 {strides = array<i32>} : memref<8x128xf32, #tpu.memory_space<vmem>>, vector<8x128xf32>,
    return
  }
  func.func @transform_0(%arg0: i32) -> (i32, i32, i32) {
    %c0_i32 = arith.constant 0 : i32
    %c0_i32_0 = arith.constant 0 : i32
    %c0_i32_1 = arith.constant 0 : i32
    return %c0_i32, %arg0, %c0_i32_0 : i32, i32, i32
  }
  func.func @transform_1(%arg0: i32) -> (i32, i32) {
    %c0_i32 = arith.constant 0 : i32
    %c0_i32_0 = arith.constant 0 : i32
    %c0_i32_1 = arith.constant 0 : i32
    return %c0_i32, %c0_i32_0 : i32, i32
  }
  func.func @transform_2(%arg0: i32) -> (i32, i32) {
    %c0_i32 = arith.constant 0 : i32
    %c0_i32_0 = arith.constant 0 : i32
    %c0_i32_1 = arith.constant 0 : i32
    return %c0_i32, %c0_i32_0 : i32, i32
  }
  func.func @transform_3(%arg0: i32) -> (i32, i32) {
    %c0_i32 = arith.constant 0 : i32
    %c0_i32_0 = arith.constant 0 : i32
    %c0_i32_1 = arith.constant 0 : i32
    return %c0_i32, %c0_i32_0 : i32, i32
  }
  func.func @transform_4(%arg0: i32) -> (i32, i32) {
    %c0_i32 = arith.constant 0 : i32
    %c0_i32_0 = arith.constant 0 : i32
    %c0_i32_1 = arith.constant 0 : i32
    return %c0_i32, %c0_i32_0 : i32, i32
  }
  func.func @transform_5(%arg0: i32) -> (i32, i32) {
    %c0_i32 = arith.constant 0 : i32
    %c0_i32_0 = arith.constant 0 : i32
    %c0_i32_1 = arith.constant 0 : i32
    return %c0_i32, %c0_i32_0 : i32, i32
  }
  func.func @transform_6(%arg0: i32) -> (i32, i32) {
    %c0_i32 = arith.constant 0 : i32
    %c0_i32_0 = arith.constant 0 : i32
    return %arg0, %c0_i32 : i32, i32
  }
}

</mosaic_0001>

<bundles_post_ra>
// kernel: lstm_network_forward.1
= control target key start
LH: loop header
LB: loop body
LE: loop exit
PB: predicated region body
PF: predicated region fallthrough
CT: control target
= control target key end

     0   :  { %11 = vsyncpa [#allocation4], 0  ;;  %s2754_s0 = inlined_call_operand.vmem [shape: f32[8,8,128], index: 0, kind: input, shape index: {}]   ;;  %s2755_s1 = inlined_call_operand.hbm [shape: bf16[128,512], index: 1, kind: input, shape index: {}]   ;;  %s2756_s2 = inlined_call_operand.hbm [shape: bf16[128,512], index: 2, kind: input, shape index: {}]   ;;  %s2757_s3 = inlined_call_operand.hbm [shape: f32[1,512], index: 3, kind: input, shape index: {}]   ;;  %s2758_s4 = inlined_call_operand.vmem [shape: f32[128,128], index: 4, kind: input, shape index: {}]   ;;  %s2759_s5 = inlined_call_operand.vmem [shape: f32[1,128], index: 5, kind: input, shape index: {}]   ;;  %s2760_s6 = inlined_call_operand.vmem [shape: f32[8,128], index: 6, kind: output, shape index: {}]  }
   0x1   :  { %12 = vsyncpa [#allocation6], 0  ;;  %s2089_s21 = smov [#allocation5]   ;;  %s2090_s23 = smov [#allocation3]  }
   0x2   :  { %s32_s22 = sshll.u32 %s2089_s21, 4  ;;  %s20_s24 = sshll.u32 %s2090_s23, 4  ;;  %s33_s22 = int_to_ptr.vmem [resolvable:$true] %s32_s22  ;;  %s2133_s24 = int_to_ptr.vmem [resolvable:$true] %s20_s24 }
   0x3   :  { %s2019_s27 = scalar_lea.hbm %s2756_s2, 4096 }
   0x4   :  { %p2020_p0 = scmp.ne.s32.totalorder %s2756_s2, %s2019_s27  ;;  %p2023_p1 = scmp.lt.u32.totalorder %s2019_s27, %s2756_s2 }
   0x6   :  { %p2025_p2 = pnand %p2023_p1, %p2020_p0 }
   0x8   :  { %2028 = shalt.err (!%p2025_p2)
}
   0x9   :  { %s2029_s8 = scalar_lea.vmem %s33_s22, 4096  ;;  %p2034_p4 = scmp.lt.s32.totalorder %s33_s22, %s33_s22 }
   0xa   :  { %p2030_p3 = scmp.ne.s32.totalorder %s33_s22, %s2029_s8  ;;  %p2035_p5 = scmp.lt.s32.totalorder %s2029_s8, %s2029_s8 }
   0xc   :  { %p2036_p6 = por %p2035_p5, %p2034_p4 }
   0xe   :  { %p2037_p7 = pnand %p2036_p6, %p2030_p3 }
  0x10   :  { %2040 = shalt.err (!%p2037_p7)
}
  0x11   :  { %s2091_s9 = smov 256   ;;  %s2092_s10 = smov 16  }
  0x12   :  { %38 = dma.hbm_to_vmem [thread:$0]  %s2756_s2, 4096, %s33_s22, [#allocation6], %s2091_s9, %s2091_s9, %s2092_s10  }
  0x13   :  { %s2041_s15 = scalar_lea.hbm %s2755_s1, 4096 }
  0x14   :  { %p2042_p8 = scmp.ne.s32.totalorder %s2755_s1, %s2041_s15  ;;  %p2045_p9 = scmp.lt.u32.totalorder %s2041_s15, %s2755_s1 }
  0x16   :  { %p2047_p10 = pnand %p2045_p9, %p2042_p8 }
  0x18   :  { %2050 = shalt.err (!%p2047_p10)
}
  0x19   :  { %s2051_s20 = scalar_lea.vmem %s2133_s24, 4096  ;;  %p2056_p12 = scmp.lt.s32.totalorder %s2133_s24, %s2133_s24 }
  0x1a   :  { %p2052_p11 = scmp.ne.s32.totalorder %s2133_s24, %s2051_s20  ;;  %p2057_p13 = scmp.lt.s32.totalorder %s2051_s20, %s2051_s20 }
  0x1c   :  { %p2058_p0 = por %p2057_p13, %p2056_p12 }
  0x1e   :  { %p2059_p1 = pnand %p2058_p0, %p2052_p11 }
  0x20   :  { %2062 = shalt.err (!%p2059_p1)
}
  0x21   :  { %26 = dma.hbm_to_vmem [thread:$0]  %s2755_s1, 4096, %s2133_s24, [#allocation4], %s2091_s9, %s2091_s9, %s2092_s10  }
  0x22   :  { %s2093_s22 = smov [#allocation7]   ;;  %s2063_s27 = scalar_lea.hbm %s2757_s3, 64 }
  0x23   :  { %s45_s23 = sshll.u32 %s2093_s22, 4  ;;  %p2064_p2 = scmp.ne.s32.totalorder %s2757_s3, %s2063_s27  ;;  %s46_s23 = int_to_ptr.vmem [resolvable:$true] %s45_s23 }
  0x24   :  { %p2067_p3 = scmp.lt.u32.totalorder %s2063_s27, %s2757_s3 }
  0x26   :  { %p2069_p4 = pnand %p2067_p3, %p2064_p2 }
  0x28   :  { %2072 = shalt.err (!%p2069_p4)
}
  0x29   :  { %s2073_s8 = scalar_lea.vmem %s46_s23, 64  ;;  %p2078_p6 = scmp.lt.s32.totalorder %s46_s23, %s46_s23 }
  0x2a   :  { %p2074_p5 = scmp.ne.s32.totalorder %s46_s23, %s2073_s8  ;;  %p2079_p7 = scmp.lt.s32.totalorder %s2073_s8, %s2073_s8 }
  0x2c   :  { %p2080_p8 = por %p2079_p7, %p2078_p6 }
  0x2e   :  { %p2081_p9 = pnand %p2080_p8, %p2074_p5 }
  0x30   :  { %2084 = shalt.err (!%p2081_p9)
}
  0x31   :  { %48 = dma.hbm_to_vmem [thread:$0]  %s2757_s3, 64, %s46_s23, [#allocation6]  }
  0x32   :  { %2085 = dma.done.wait [#allocation4], 4096  }
  0x33   :  { %2086 = vsyncadd [#allocation4], 4294963200 }
  0x34   :  { %2087 = dma.done.wait [#allocation6], 4160  }
  0x35   :  { %2088 = vsyncadd [#allocation6], 4294963136  ;;  %v2761_v0 = vmov 0   ;;  %v1811_v1 = vld [vmem:[#allocation3 + $0x4] ss:$16 sps:$4 sm:$0xff]   ;;  %v64_v34 = vld [vmem:[%s2754_s0 + $0x8] sm:$0xff] }
  0x36   :  { %321 = vmatprep.mubr.bf16.mxu0 %v2761_v0  ;;  %394 = vmatprep.mubr.bf16.mxu1 %v2761_v0  ;;  %v1813_v2 = vld [vmem:[#allocation3 + $0xc] ss:$16 sps:$4 sm:$0xff]   ;;  %v1815_v3 = vld [vmem:[#allocation3] ss:$16 sps:$4 sm:$0xff]   ;;  %v1816_v4 = vld [vmem:[#allocation3 + $0x8] ss:$16 sps:$4 sm:$0xff]  }
  0x37   :  { %289 = vmatprep.subr.bf16.mxu0 %v1811_v1  ;;  %362 = vmatprep.subr.bf16.mxu1 %v1813_v2  ;;  %v1817_v5 = vld [vmem:[#allocation3 + $0x24] ss:$16 sps:$4 sm:$0xff]   ;;  %v1819_v6 = vld [vmem:[#allocation3 + $0x2c] ss:$16 sps:$4 sm:$0xff]   ;;  %v1821_v7 = vld [vmem:[#allocation3 + $0x20] ss:$16 sps:$4 sm:$0xff]  }
  0x38   :  { %290 = vmatpush1.bf16.msra.mxu0 %v1815_v3  ;;  %363 = vmatpush1.bf16.msra.mxu1 %v1816_v4  ;;  %v1822_v8 = vld [vmem:[#allocation3 + $0x28] ss:$16 sps:$4 sm:$0xff]   ;;  %v1823_v9 = vld [vmem:[#allocation3 + $0x44] ss:$16 sps:$4 sm:$0xff]   ;;  %v1825_v10 = vld [vmem:[#allocation3 + $0x4c] ss:$16 sps:$4 sm:$0xff]  }
  0x39   :  { %291 = vmatprep.subr.bf16.mxu0 %v1817_v5  ;;  %364 = vmatprep.subr.bf16.mxu1 %v1819_v6  ;;  %v1827_v11 = vld [vmem:[#allocation3 + $0x40] ss:$16 sps:$4 sm:$0xff]   ;;  %v1828_v12 = vld [vmem:[#allocation3 + $0x48] ss:$16 sps:$4 sm:$0xff]   ;;  %v1829_v13 = vld [vmem:[#allocation3 + $0x64] ss:$16 sps:$4 sm:$0xff]  }
  0x3a   :  { %v1831_v14 = vld [vmem:[#allocation3 + $0x6c] ss:$16 sps:$4 sm:$0xff]   ;;  %v1833_v15 = vld [vmem:[#allocation3 + $0x60] ss:$16 sps:$4 sm:$0xff]   ;;  %v1834_v16 = vld [vmem:[#allocation3 + $0x68] ss:$16 sps:$4 sm:$0xff]  }
  0x3b   :  { %v1835_v17 = vld [vmem:[#allocation3 + $0x84] ss:$16 sps:$4 sm:$0xff]   ;;  %v1837_v18 = vld [vmem:[#allocation3 + $0x8c] ss:$16 sps:$4 sm:$0xff]   ;;  %v1839_v19 = vld [vmem:[#allocation3 + $0x80] ss:$16 sps:$4 sm:$0xff]  }
  0x3c   :  { %292 = vmatpush1.bf16.msra.mxu0 %v1821_v7  ;;  %365 = vmatpush1.bf16.msra.mxu1 %v1822_v8  ;;  %v1840_v20 = vld [vmem:[#allocation3 + $0x88] ss:$16 sps:$4 sm:$0xff]   ;;  %v1841_v21 = vld [vmem:[#allocation3 + $0xa4] ss:$16 sps:$4 sm:$0xff]   ;;  %v1843_v22 = vld [vmem:[#allocation3 + $0xac] ss:$16 sps:$4 sm:$0xff]  }
  0x3d   :  { %293 = vmatprep.subr.bf16.mxu0 %v1823_v9  ;;  %366 = vmatprep.subr.bf16.mxu1 %v1825_v10  ;;  %v1845_v23 = vld [vmem:[#allocation3 + $0xa0] ss:$16 sps:$4 sm:$0xff]   ;;  %v1846_v24 = vld [vmem:[#allocation3 + $0xa8] ss:$16 sps:$4 sm:$0xff]   ;;  %v1847_v25 = vld [vmem:[#allocation3 + $0xc4] ss:$16 sps:$4 sm:$0xff]  }
  0x3e   :  { %v1849_v26 = vld [vmem:[#allocation3 + $0xcc] ss:$16 sps:$4 sm:$0xff]   ;;  %v1851_v27 = vld [vmem:[#allocation3 + $0xc0] ss:$16 sps:$4 sm:$0xff]   ;;  %v1852_v28 = vld [vmem:[#allocation3 + $0xc8] ss:$16 sps:$4 sm:$0xff]  }
  0x3f   :  { %v1853_v29 = vld [vmem:[#allocation3 + $0xe4] ss:$16 sps:$4 sm:$0xff]   ;;  %v1855_v30 = vld [vmem:[#allocation3 + $0xec] ss:$16 sps:$4 sm:$0xff]   ;;  %v1857_v31 = vld [vmem:[#allocation3 + $0xe0] ss:$16 sps:$4 sm:$0xff]  }
  0x40   :  { %294 = vmatpush1.bf16.msra.mxu0 %v1827_v11  ;;  %367 = vmatpush1.bf16.msra.mxu1 %v1828_v12  ;;  %v1858_v32 = vld [vmem:[#allocation3 + $0xe8] ss:$16 sps:$4 sm:$0xff]   ;;  %v63_v33 = vld [vmem:[%s2754_s0] sm:$0xff]  ;;  %v2186_v36 = vld [vmem:[#allocation5 + $0xc] ss:$16 sps:$4 sm:$0xff]   ;;  %vm2096_vm0 = vmmov 0  }
  0x41   :  { %295 = vmatprep.subr.bf16.mxu0 %v1829_v13  ;;  %368 = vmatprep.subr.bf16.mxu1 %v1831_v14  ;;  %v2184_v35 = vld [vmem:[#allocation5 + $0x4] ss:$16 sps:$4 sm:$0xff]   ;;  %v71_v37 = vpack.c.bf16 %v64_v34, %v63_v33  ;;  %v2188_v38 = vld [vmem:[#allocation5] ss:$16 sps:$4 sm:$0xff]   ;;  %v2190_v39 = vld [vmem:[#allocation5 + $0x8] ss:$16 sps:$4 sm:$0xff]   ;;  %v109_v14 = vlaneseq }
  0x42   :  { %v2194_v40 = vld [vmem:[#allocation5 + $0x24] ss:$16 sps:$4 sm:$0xff]   ;;  %v2196_v41 = vld [vmem:[#allocation5 + $0x2c] ss:$16 sps:$4 sm:$0xff]   ;;  %v2198_v42 = vld [vmem:[#allocation5 + $0x20] ss:$16 sps:$4 sm:$0xff]  }
  0x43   :  { %v2200_v43 = vld [vmem:[#allocation5 + $0x28] ss:$16 sps:$4 sm:$0xff]   ;;  %v65_v44 = vld [vmem:[%s2754_s0 + $0x10] sm:$0xff]  ;;  %v2214_v47 = vld [vmem:[#allocation5 + $0x4c] ss:$16 sps:$4 sm:$0xff]  }
  0x44   :  { %296 = vmatpush1.bf16.msra.mxu0 %v1833_v15  ;;  %369 = vmatpush1.bf16.msra.mxu1 %v1834_v16  ;;  %v66_v45 = vld [vmem:[%s2754_s0 + $0x18] sm:$0xff]  ;;  %v2210_v46 = vld [vmem:[#allocation5 + $0x44] ss:$16 sps:$4 sm:$0xff]   ;;  %v2218_v49 = vld [vmem:[#allocation5 + $0x40] ss:$16 sps:$4 sm:$0xff]   ;;  %v110_v15 = vshrl.u32 %v109_v14, 7 }
  0x45   :  { %297 = vmatprep.subr.bf16.mxu0 %v1835_v17  ;;  %370 = vmatprep.subr.bf16.mxu1 %v1837_v18  ;;  %v72_v48 = vpack.c.bf16 %v66_v45, %v65_v44  ;;  %v2220_v50 = vld [vmem:[#allocation5 + $0x48] ss:$16 sps:$4 sm:$0xff]   ;;  %v2224_v51 = vld [vmem:[#allocation5 + $0x64] ss:$16 sps:$4 sm:$0xff]   ;;  %v2228_v52 = vld [vmem:[#allocation5 + $0x6c] ss:$16 sps:$4 sm:$0xff]  }
  0x46   :  { %v2230_v53 = vld [vmem:[#allocation5 + $0x60] ss:$16 sps:$4 sm:$0xff]   ;;  %v2232_v54 = vld [vmem:[#allocation5 + $0x68] ss:$16 sps:$4 sm:$0xff]   ;;  %v2244_v57 = vld [vmem:[#allocation5 + $0x84] ss:$16 sps:$4 sm:$0xff]  }
  0x47   :  { %v67_v55 = vld [vmem:[%s2754_s0 + $0x20] sm:$0xff]  ;;  %v68_v56 = vld [vmem:[%s2754_s0 + $0x28] sm:$0xff]  ;;  %v69_v3 = vld [vmem:[%s2754_s0 + $0x30] sm:$0xff]  ;;  %v119_v16 = vsub.s32 2, %v110_v15  ;;  %v123_v17 = vsub.s32 3, %v110_v15  ;;  %v111_v18 = vsub.s32 0, %v110_v15 }
  0x48   :  { %298 = vmatpush1.bf16.msra.mxu0 %v1839_v19  ;;  %371 = vmatpush1.bf16.msra.mxu1 %v1840_v20  ;;  %v2246_v58 = vld [vmem:[#allocation5 + $0x8c] ss:$16 sps:$4 sm:$0xff]   ;;  %v73_v59 = vpack.c.bf16 %v68_v56, %v67_v55  ;;  %v2252_v60 = vld [vmem:[#allocation5 + $0x80] ss:$16 sps:$4 sm:$0xff]   ;;  %v2254_v61 = vld [vmem:[#allocation5 + $0x88] ss:$16 sps:$4 sm:$0xff]  }
  0x49   :  { %299 = vmatprep.subr.bf16.mxu0 %v1841_v21  ;;  %372 = vmatprep.subr.bf16.mxu1 %v1843_v22  ;;  %v2258_v62 = vld [vmem:[#allocation5 + $0xa4] ss:$16 sps:$4 sm:$0xff]   ;;  %v2260_v63 = vld [vmem:[#allocation5 + $0xac] ss:$16 sps:$4 sm:$0xff]   ;;  %v2262_v1 = vld [vmem:[#allocation5 + $0xa0] ss:$16 sps:$4 sm:$0xff]  }
  0x4a   :  { %v2266_v2 = vld [vmem:[#allocation5 + $0xa8] ss:$16 sps:$4 sm:$0xff]   ;;  %v2276_v5 = vld [vmem:[#allocation5 + $0xc4] ss:$16 sps:$4 sm:$0xff]   ;;  %v2278_v6 = vld [vmem:[#allocation5 + $0xcc] ss:$16 sps:$4 sm:$0xff]  }
  0x4b   :  { %v70_v4 = vld [vmem:[%s2754_s0 + $0x38] sm:$0xff]  ;;  %v2284_v8 = vld [vmem:[#allocation5 + $0xc0] ss:$16 sps:$4 sm:$0xff]   ;;  %v2290_v10 = vld [vmem:[#allocation5 + $0xe4] ss:$16 sps:$4 sm:$0xff]   ;;  %v115_v20 = vsub.s32 1, %v110_v15 }
  0x4c   :  { %300 = vmatpush1.bf16.msra.mxu0 %v1845_v23  ;;  %373 = vmatpush1.bf16.msra.mxu1 %v1846_v24  ;;  %v74_v7 = vpack.c.bf16 %v70_v4, %v69_v3  ;;  %v2286_v9 = vld [vmem:[#allocation5 + $0xc8] ss:$16 sps:$4 sm:$0xff]   ;;  %v2292_v11 = vld [vmem:[#allocation5 + $0xec] ss:$16 sps:$4 sm:$0xff]   ;;  %v2296_v12 = vld [vmem:[#allocation5 + $0xe0] ss:$16 sps:$4 sm:$0xff]  }
  0x4d   :  { %301 = vmatprep.subr.bf16.mxu0 %v1847_v25  ;;  %374 = vmatprep.subr.bf16.mxu1 %v1849_v26  ;;  %v2298_v13 = vld [vmem:[#allocation5 + $0xe8] ss:$16 sps:$4 sm:$0xff]   ;;  %v107_v19 = vld [vmem:[#allocation7] sm:$0xf] }
  0x4e   :  { %v2344_v21 = vrot.slane %v107_v19, %v119_v16  ;;  %v2350_v24 = vrot.slane %v107_v19, %v123_v17  ;;  %v112_v25 = vrot.slane %v107_v19, %v111_v18 }
  0x50   :  { %302 = vmatpush1.bf16.msra.mxu0 %v1851_v27  ;;  %375 = vmatpush1.bf16.msra.mxu1 %v1852_v28  ;;  %v116_v28 = vrot.slane %v107_v19, %v115_v20 }
  0x51   :  { %303 = vmatprep.subr.bf16.mxu0 %v1853_v29  ;;  %376 = vmatprep.subr.bf16.mxu1 %v1855_v30 }
  0x54   :  { %304 = vmatpush1.bf16.msra.mxu0 %v1857_v31  ;;  %377 = vmatpush1.bf16.msra.mxu1 %v1858_v32 }
  0x55   :  { %666 = vmatprep.subr.bf16.mxu0 %v2184_v35  ;;  %707 = vmatprep.subr.bf16.mxu1 %v2186_v36 }
  0x57   :  { %322 = vmatmul.mubr.bf16.vlgmr.msra.gmra.mrb[0].mxu0 %v71_v37  ;;  %395 = vmatmul.mubr.bf16.vlgmr.msra.gmra.mrb[0].mxu1 %v71_v37 }
  0x58   :  { %667 = vmatpush1.bf16.msra.mxu0 %v2188_v38  ;;  %708 = vmatpush1.bf16.msra.mxu1 %v2190_v39 }
  0x59   :  { %668 = vmatprep.subr.bf16.mxu0 %v2194_v40  ;;  %709 = vmatprep.subr.bf16.mxu1 %v2196_v41 }
  0x5a   :  { %331 = vmatprep.mubr.bf16.mxu0 %v2761_v0  ;;  %404 = vmatprep.mubr.bf16.mxu1 %v2761_v0 }
  0x5c   :  { %669 = vmatpush1.bf16.msra.mxu0 %v2198_v42  ;;  %710 = vmatpush1.bf16.msra.mxu1 %v2200_v43 }
  0x5d   :  { %670 = vmatprep.subr.bf16.mxu0 %v2210_v46  ;;  %711 = vmatprep.subr.bf16.mxu1 %v2214_v47 }
  0x5f   :  { %332 = vmatmul.mubr.bf16.gmra.mrb[4].mxu0 %v72_v48  ;;  %405 = vmatmul.mubr.bf16.gmra.mrb[4].mxu1 %v72_v48 }
  0x60   :  { %671 = vmatpush1.bf16.msra.mxu0 %v2218_v49  ;;  %712 = vmatpush1.bf16.msra.mxu1 %v2220_v50 }
  0x61   :  { %672 = vmatprep.subr.bf16.mxu0 %v2224_v51  ;;  %713 = vmatprep.subr.bf16.mxu1 %v2228_v52 }
  0x62   :  { %341 = vmatprep.mubr.bf16.mxu0 %v2761_v0  ;;  %414 = vmatprep.mubr.bf16.mxu1 %v2761_v0 }
  0x64   :  { %673 = vmatpush1.bf16.msra.mxu0 %v2230_v53  ;;  %714 = vmatpush1.bf16.msra.mxu1 %v2232_v54 }
  0x65   :  { %674 = vmatprep.subr.bf16.mxu0 %v2244_v57  ;;  %715 = vmatprep.subr.bf16.mxu1 %v2246_v58 }
  0x67   :  { %342 = vmatmul.mubr.bf16.gmra.mrb[8].mxu0 %v73_v59  ;;  %415 = vmatmul.mubr.bf16.gmra.mrb[8].mxu1 %v73_v59 }
  0x68   :  { %675 = vmatpush1.bf16.msra.mxu0 %v2252_v60  ;;  %716 = vmatpush1.bf16.msra.mxu1 %v2254_v61 }
  0x69   :  { %676 = vmatprep.subr.bf16.mxu0 %v2258_v62  ;;  %717 = vmatprep.subr.bf16.mxu1 %v2260_v63 }
  0x6a   :  { %351 = vmatprep.mubr.bf16.mxu0 %v2761_v0  ;;  %424 = vmatprep.mubr.bf16.mxu1 %v2761_v0 }
  0x6c   :  { %677 = vmatpush1.bf16.msra.mxu0 %v2262_v1  ;;  %718 = vmatpush1.bf16.msra.mxu1 %v2266_v2 }
  0x6d   :  { %678 = vmatprep.subr.bf16.mxu0 %v2276_v5  ;;  %719 = vmatprep.subr.bf16.mxu1 %v2278_v6 }
  0x6f   :  { %352 = vmatmul.mubr.bf16.gmra.mrb[12].mxu0 %v74_v7  ;;  %425 = vmatmul.mubr.bf16.gmra.mrb[12].mxu1 %v74_v7 }
  0x70   :  { %679 = vmatpush1.bf16.msra.mxu0 %v2284_v8  ;;  %720 = vmatpush1.bf16.msra.mxu1 %v2286_v9 }
  0x71   :  { %680 = vmatprep.subr.bf16.mxu0 %v2290_v10  ;;  %721 = vmatprep.subr.bf16.mxu1 %v2292_v11 }
  0x72   :  { %698 = vmatprep.mubr.bf16.mxu0 %v2761_v0  ;;  %739 = vmatprep.mubr.bf16.mxu1 %v2761_v0 }
  0x74   :  { %681 = vmatpush1.bf16.msra.mxu0 %v2296_v12  ;;  %722 = vmatpush1.bf16.msra.mxu1 %v2298_v13 }
  0x75   :  { %778 = vmatprep.subr.bf16.mxu0 %v2184_v35  ;;  %819 = vmatprep.subr.bf16.mxu1 %v2186_v36 }
  0x77   :  { %699 = vmatmul.mubr.bf16.vlgmr.msra.gmra.mrb[16].mxu0 %v2761_v0  ;;  %740 = vmatmul.mubr.bf16.vlgmr.msra.gmra.mrb[16].mxu1 %v2761_v0 }
  0x78   :  { %779 = vmatpush1.bf16.msra.mxu0 %v2188_v38  ;;  %820 = vmatpush1.bf16.msra.mxu1 %v2190_v39 }
  0x79   :  { %780 = vmatprep.subr.bf16.mxu0 %v2194_v40  ;;  %821 = vmatprep.subr.bf16.mxu1 %v2196_v41 }
  0x7a   :  { %810 = vmatprep.mubr.bf16.mxu0 %v2761_v0  ;;  %851 = vmatprep.mubr.bf16.mxu1 %v2761_v0 }
  0x7c   :  { %781 = vmatpush1.bf16.msra.mxu0 %v2198_v42  ;;  %822 = vmatpush1.bf16.msra.mxu1 %v2200_v43 }
  0x7d   :  { %782 = vmatprep.subr.bf16.mxu0 %v2210_v46  ;;  %823 = vmatprep.subr.bf16.mxu1 %v2214_v47 }
  0x80   :  { %783 = vmatpush1.bf16.msra.mxu0 %v2218_v49  ;;  %824 = vmatpush1.bf16.msra.mxu1 %v2220_v50 }
  0x81   :  { %784 = vmatprep.subr.bf16.mxu0 %v2224_v51  ;;  %825 = vmatprep.subr.bf16.mxu1 %v2228_v52 }
  0x84   :  { %785 = vmatpush1.bf16.msra.mxu0 %v2230_v53  ;;  %826 = vmatpush1.bf16.msra.mxu1 %v2232_v54 }
  0x85   :  { %786 = vmatprep.subr.bf16.mxu0 %v2244_v57  ;;  %827 = vmatprep.subr.bf16.mxu1 %v2246_v58 }
  0x88   :  { %787 = vmatpush1.bf16.msra.mxu0 %v2252_v60  ;;  %828 = vmatpush1.bf16.msra.mxu1 %v2254_v61 }
  0x89   :  { %788 = vmatprep.subr.bf16.mxu0 %v2258_v62  ;;  %829 = vmatprep.subr.bf16.mxu1 %v2260_v63 }
  0x8c   :  { %789 = vmatpush1.bf16.msra.mxu0 %v2262_v1  ;;  %830 = vmatpush1.bf16.msra.mxu1 %v2266_v2 }
  0x8d   :  { %790 = vmatprep.subr.bf16.mxu0 %v2276_v5  ;;  %831 = vmatprep.subr.bf16.mxu1 %v2278_v6 }
  0x90   :  { %791 = vmatpush1.bf16.msra.mxu0 %v2284_v8  ;;  %832 = vmatpush1.bf16.msra.mxu1 %v2286_v9 }
  0x91   :  { %792 = vmatprep.subr.bf16.mxu0 %v2290_v10  ;;  %833 = vmatprep.subr.bf16.mxu1 %v2292_v11 }
  0x94   :  { %793 = vmatpush1.bf16.msra.mxu0 %v2296_v12  ;;  %834 = vmatpush1.bf16.msra.mxu1 %v2298_v13 }
  0x95   :  { %890 = vmatprep.subr.bf16.mxu0 %v2184_v35  ;;  %931 = vmatprep.subr.bf16.mxu1 %v2186_v36 }
 0x12a   :  { %v2346_v22 = vpop.f32.mrb[0].mxu0  ;;  %v2348_v23 = vpop.f32.mrb[0].mxu1 }
 0x12b   :  { %v325_v26 = vpop.f32.mrb[1].mxu0  ;;  %v398_v27 = vpop.f32.mrb[1].mxu1 }
 0x12c   :  { %v327_v29 = vpop.f32.mrb[2].mxu0  ;;  %v400_v30 = vpop.f32.mrb[2].mxu1 }
 0x12d   :  { %v2352_v31 = vadd.f32 %v327_v29, %v112_v25  ;;  %v329_v32 = vpop.f32.mrb[3].mxu0  ;;  %v2355_v33 = vadd.f32 %v400_v30, %v2344_v21  ;;  %v402_v34 = vpop.f32.mrb[3].mxu1 }
 0x12e   :  { %v2357_v37 = vadd.f32 %v329_v32, %v116_v28  ;;  %v2360_v44 = vadd.f32 %v402_v34, %v2350_v24 }
 0x132   :  { %v333_v45 = vpop.f32.mrb[4].mxu0  ;;  %v406_v48 = vpop.f32.mrb[4].mxu1 }
 0x133   :  { %v2362_v55 = vadd.f32 %v333_v45, %v112_v25  ;;  %v335_v56 = vpop.f32.mrb[5].mxu0  ;;  %v2365_v59 = vadd.f32 %v406_v48, %v2344_v21  ;;  %v408_v3 = vpop.f32.mrb[5].mxu1 }
 0x134   :  { %v2367_v4 = vadd.f32 %v335_v56, %v116_v28  ;;  %v337_v7 = vpop.f32.mrb[6].mxu0  ;;  %v2370_v14 = vadd.f32 %v408_v3, %v2350_v24  ;;  %v410_v15 = vpop.f32.mrb[6].mxu1 }
 0x135   :  { %v2372_v16 = vadd.f32 %v337_v7, %v112_v25  ;;  %v339_v17 = vpop.f32.mrb[7].mxu0  ;;  %v2375_v18 = vadd.f32 %v410_v15, %v2344_v21  ;;  %v412_v19 = vpop.f32.mrb[7].mxu1 }
 0x136   :  { %2763 = vst [vmem:[#allocation10_spill] sm:$0xff] %v2370_v14  ;;  %v2377_v20 = vadd.f32 %v339_v17, %v116_v28  ;;  %v2380_v29 = vadd.f32 %v412_v19, %v2350_v24 }
 0x137   :  { %2764 = vst [vmem:[#allocation11_spill] sm:$0xff] %v2372_v16  ;;  %2765 = vst [vmem:[#allocation12_spill] sm:$0xff] %v2375_v18 }
 0x138   :  { %2766 = vst [vmem:[#allocation13_spill] sm:$0xff] %v2377_v20  ;;  %2767 = vst [vmem:[#allocation14_spill] sm:$0xff] %v2380_v29 }
 0x13a   :  { %v343_v30 = vpop.f32.mrb[8].mxu0  ;;  %v416_v32 = vpop.f32.mrb[8].mxu1 }
 0x13b   :  { %v2382_v34 = vadd.f32 %v343_v30, %v112_v25  ;;  %v345_v45 = vpop.f32.mrb[9].mxu0  ;;  %v2385_v48 = vadd.f32 %v416_v32, %v2344_v21  ;;  %v418_v56 = vpop.f32.mrb[9].mxu1 }
 0x13c   :  { %v2387_v3 = vadd.f32 %v345_v45, %v116_v28  ;;  %v347_v7 = vpop.f32.mrb[10].mxu0  ;;  %v2390_v15 = vadd.f32 %v418_v56, %v2350_v24  ;;  %v420_v17 = vpop.f32.mrb[10].mxu1 }
 0x13d   :  { %2768 = vst [vmem:[#allocation15_spill] sm:$0xff] %v2382_v34  ;;  %2769 = vst [vmem:[#allocation16_spill] sm:$0xff] %v2385_v48  ;;  %v2392_v0 = vadd.f32 %v347_v7, %v112_v25  ;;  %v349_v19 = vpop.f32.mrb[11].mxu0  ;;  %v2395_v29 = vadd.f32 %v420_v17, %v2344_v21  ;;  %v422_v30 = vpop.f32.mrb[11].mxu1 }
 0x13e   :  { %2770 = vst [vmem:[#allocation17_spill] sm:$0xff] %v2387_v3  ;;  %2771 = vst [vmem:[#allocation18_spill] sm:$0xff] %v2390_v15  ;;  %v2397_v34 = vadd.f32 %v349_v19, %v116_v28  ;;  %v2400_v32 = vadd.f32 %v422_v30, %v2350_v24 }
 0x13f   :  { %2772 = vst [vmem:[#allocation19_spill] sm:$0xff] %v2392_v0  ;;  %2773 = vst [vmem:[#allocation20_spill] sm:$0xff] %v2395_v29 }
 0x140   :  { %2774 = vst [vmem:[#allocation21_spill] sm:$0xff] %v2397_v34  ;;  %2775 = vst [vmem:[#allocation22_spill] sm:$0xff] %v2400_v32 }
 0x142   :  { %v353_v48 = vpop.f32.mrb[12].mxu0  ;;  %v426_v45 = vpop.f32.mrb[12].mxu1 }
 0x143   :  { %v2402_v3 = vadd.f32 %v353_v48, %v112_v25  ;;  %v355_v20 = vpop.f32.mrb[13].mxu0  ;;  %v2405_v56 = vadd.f32 %v426_v45, %v2344_v21  ;;  %v428_v7 = vpop.f32.mrb[13].mxu1 }
 0x144   :  { %v2407_v0 = vadd.f32 %v355_v20, %v116_v28  ;;  %v357_v15 = vpop.f32.mrb[14].mxu0  ;;  %v2410_v17 = vadd.f32 %v428_v7, %v2350_v24  ;;  %v430_v19 = vpop.f32.mrb[14].mxu1  ;;  %v324_v20 = vadd.f32 %v2346_v22, %v112_v25  ;;  %v326_v7 = vadd.f32 %v325_v26, %v116_v28 }
 0x145   :  { %2776 = vst [vmem:[#allocation23_spill] sm:$0xff] %v2402_v3  ;;  %2777 = vst [vmem:[#allocation24_spill] sm:$0xff] %v2405_v56  ;;  %v2412_v34 = vadd.f32 %v357_v15, %v112_v25  ;;  %v359_v30 = vpop.f32.mrb[15].mxu0  ;;  %v2415_v32 = vadd.f32 %v430_v19, %v2344_v21  ;;  %v432_v48 = vpop.f32.mrb[15].mxu1 }
 0x146   :  { %2778 = vst [vmem:[#allocation25_spill] sm:$0xff] %v2407_v0  ;;  %2779 = vst [vmem:[#allocation26_spill] sm:$0xff] %v2410_v17  ;;  %v2417_v3 = vadd.f32 %v359_v30, %v116_v28  ;;  %v2420_v45 = vadd.f32 %v432_v48, %v2350_v24  ;;  %v397_v0 = vadd.f32 %v2348_v23, %v2344_v21 }
 0x147   :  { %2780 = vst [vmem:[#allocation27_spill] sm:$0xff] %v2412_v34  ;;  %2781 = vst [vmem:[#allocation28_spill] sm:$0xff] %v2415_v32  ;;  %v399_v17 = vadd.f32 %v398_v27, %v2350_v24 }
 0x148   :  { %2782 = vst [vmem:[#allocation29_spill] sm:$0xff] %v2417_v3  ;;  %2783 = vst [vmem:[#allocation30_spill] sm:$0xff] %v2420_v45 }
 0x14a   :  { %v700_v15 = vpop.f32.mrb[16].mxu0  ;;  %v741_v34 = vpop.f32.mrb[16].mxu1 }
 0x14b   :  { %v748_v56 = vadd.f32 %v700_v15, %v324_v20  ;;  %v750_v29 = vadd.f32 %v741_v34, %v397_v0  ;;  %v702_v19 = vpop.f32.mrb[17].mxu0  ;;  %v743_v32 = vpop.f32.mrb[17].mxu1 }
 0x14c   :  { %v749_v18 = vadd.f32 %v702_v19, %v326_v7  ;;  %v751_v30 = vadd.f32 %v743_v32, %v399_v17  ;;  %v704_v3 = vpop.f32.mrb[18].mxu0  ;;  %v745_v16 = vpop.f32.mrb[18].mxu1 }
 0x14d   :  { %v752_v48 = vmul.f32 0.5, %v748_v56  ;;  %v705_v45 = vpop.f32.mrb[19].mxu0  ;;  %v746_v14 = vpop.f32.mrb[19].mxu1 }
 0x14e   :  { %v756_v22 = vmul.f32 0.5, %v749_v18  ;;  %v761_v21 = vmul.f32 0.5, %v751_v30  ;;  %v2784_v45 = vmov 0  }
 0x14f   :  { %1907 = vtanh.f32 %v752_v48 }
 0x150   :  { %1909 = vtanh.f32 %v756_v22 }
 0x151   :  { %1911 = vtanh.f32 %v750_v29 }
 0x152   :  { %1913 = vtanh.f32 %v761_v21 }
 0x159   :  { %v1908_v23 = vpop.eup %1907 }
 0x15a   :  { %v1910_v24 = vpop.eup %1909  ;;  %v754_v25 = vmul.f32 0.5, %v1908_v23 }
 0x15b   :  { %v758_v26 = vmul.f32 0.5, %v1910_v24  ;;  %v1912_v27 = vpop.eup %1911 }
 0x15c   :  { %v755_v0 = vadd.f32 0.5, %v754_v25  ;;  %v1914_v14 = vpop.eup %1913 }
 0x15d   :  { %v759_v28 = vadd.f32 0.5, %v758_v26  ;;  %v763_v16 = vmul.f32 0.5, %v1914_v14 }
 0x15e   :  { %v766_v34 = vmul.f32 %v1912_v27, %v755_v0 }
 0x15f   :  { %v765_v32 = vmul.f32 0.0, %v759_v28  ;;  %v764_v18 = vadd.f32 0.5, %v763_v16 }
 0x161   :  { %v2426_v3 = vadd.f32 %v766_v34, %v765_v32 }
 0x163   :  { %1915 = vtanh.f32 %v2426_v3 }
 0x16d   :  { %v1916_v56 = vpop.eup %1915 }
 0x16e   :  { %v769_v29 = vmul.f32 %v1916_v56, %v764_v18 }
 0x170   :  { %v777_v17 = vpack.c.bf16 %v769_v29, %v769_v29 }
 0x172   :  { %811 = vmatmul.mubr.bf16.vlgmr.msra.gmra.mrb[20].mxu0 %v777_v17  ;;  %852 = vmatmul.mubr.bf16.vlgmr.msra.gmra.mrb[20].mxu1 %v777_v17 }
 0x173   :  { %891 = vmatpush1.bf16.msra.mxu0 %v2188_v38  ;;  %932 = vmatpush1.bf16.msra.mxu1 %v2190_v39 }
 0x174   :  { %892 = vmatprep.subr.bf16.mxu0 %v2194_v40  ;;  %933 = vmatprep.subr.bf16.mxu1 %v2196_v41 }
 0x175   :  { %922 = vmatprep.mubr.bf16.mxu0 %v2784_v45  ;;  %963 = vmatprep.mubr.bf16.mxu1 %v2784_v45 }
 0x177   :  { %893 = vmatpush1.bf16.msra.mxu0 %v2198_v42  ;;  %934 = vmatpush1.bf16.msra.mxu1 %v2200_v43 }
 0x178   :  { %894 = vmatprep.subr.bf16.mxu0 %v2210_v46  ;;  %935 = vmatprep.subr.bf16.mxu1 %v2214_v47 }
 0x17b   :  { %895 = vmatpush1.bf16.msra.mxu0 %v2218_v49  ;;  %936 = vmatpush1.bf16.msra.mxu1 %v2220_v50 }
 0x17c   :  { %896 = vmatprep.subr.bf16.mxu0 %v2224_v51  ;;  %937 = vmatprep.subr.bf16.mxu1 %v2228_v52 }
 0x17f   :  { %897 = vmatpush1.bf16.msra.mxu0 %v2230_v53  ;;  %938 = vmatpush1.bf16.msra.mxu1 %v2232_v54 }
 0x180   :  { %898 = vmatprep.subr.bf16.mxu0 %v2244_v57  ;;  %939 = vmatprep.subr.bf16.mxu1 %v2246_v58 }
 0x183   :  { %899 = vmatpush1.bf16.msra.mxu0 %v2252_v60  ;;  %940 = vmatpush1.bf16.msra.mxu1 %v2254_v61 }
 0x184   :  { %900 = vmatprep.subr.bf16.mxu0 %v2258_v62  ;;  %941 = vmatprep.subr.bf16.mxu1 %v2260_v63 }
 0x187   :  { %901 = vmatpush1.bf16.msra.mxu0 %v2262_v1  ;;  %942 = vmatpush1.bf16.msra.mxu1 %v2266_v2 }
 0x188   :  { %902 = vmatprep.subr.bf16.mxu0 %v2276_v5  ;;  %943 = vmatprep.subr.bf16.mxu1 %v2278_v6 }
 0x18b   :  { %903 = vmatpush1.bf16.msra.mxu0 %v2284_v8  ;;  %944 = vmatpush1.bf16.msra.mxu1 %v2286_v9 }
 0x18c   :  { %904 = vmatprep.subr.bf16.mxu0 %v2290_v10  ;;  %945 = vmatprep.subr.bf16.mxu1 %v2292_v11 }
 0x18f   :  { %905 = vmatpush1.bf16.msra.mxu0 %v2296_v12  ;;  %946 = vmatpush1.bf16.msra.mxu1 %v2298_v13 }
 0x190   :  { %1002 = vmatprep.subr.bf16.mxu0 %v2184_v35  ;;  %1043 = vmatprep.subr.bf16.mxu1 %v2186_v36 }
 0x245   :  { %v812_v20 = vpop.f32.mrb[20].mxu0  ;;  %v853_v7 = vpop.f32.mrb[20].mxu1 }
 0x246   :  { %v860_v15 = vadd.f32 %v812_v20, %v2352_v31  ;;  %v862_v19 = vadd.f32 %v853_v7, %v2355_v33  ;;  %v814_v30 = vpop.f32.mrb[21].mxu0  ;;  %v855_v48 = vpop.f32.mrb[21].mxu1 }
 0x247   :  { %v861_v22 = vadd.f32 %v814_v30, %v2357_v37  ;;  %v863_v21 = vadd.f32 %v855_v48, %v2360_v44  ;;  %v816_v23 = vpop.f32.mrb[22].mxu0  ;;  %v857_v24 = vpop.f32.mrb[22].mxu1 }
 0x248   :  { %v864_v25 = vmul.f32 0.5, %v860_v15  ;;  %v817_v26 = vpop.f32.mrb[23].mxu0  ;;  %v858_v0 = vpop.f32.mrb[23].mxu1 }
 0x249   :  { %v868_v27 = vmul.f32 0.5, %v861_v22  ;;  %v873_v28 = vmul.f32 0.5, %v863_v21 }
 0x24a   :  { %1917 = vtanh.f32 %v864_v25  ;;  %v2785_v25 = vld [vmem:[#allocation10_spill] sm:$0xff] }
 0x24b   :  { %1919 = vtanh.f32 %v868_v27 }
 0x24c   :  { %1921 = vtanh.f32 %v862_v19 }
 0x24d   :  { %1923 = vtanh.f32 %v873_v28 }
 0x254   :  { %v1918_v34 = vpop.eup %1917 }
 0x255   :  { %v1920_v31 = vpop.eup %1919  ;;  %v866_v32 = vmul.f32 0.5, %v1918_v34 }
 0x256   :  { %v870_v33 = vmul.f32 0.5, %v1920_v31  ;;  %v1922_v16 = vpop.eup %1921 }
 0x257   :  { %v867_v14 = vadd.f32 0.5, %v866_v32  ;;  %v1924_v29 = vpop.eup %1923 }
 0x258   :  { %v871_v37 = vadd.f32 0.5, %v870_v33  ;;  %v875_v17 = vmul.f32 0.5, %v1924_v29 }
 0x259   :  { %v878_v18 = vmul.f32 %v1922_v16, %v867_v14 }
 0x25a   :  { %v877_v44 = vmul.f32 %v871_v37, %v2426_v3  ;;  %v876_v20 = vadd.f32 0.5, %v875_v17 }
 0x25c   :  { %v2468_v56 = vadd.f32 %v878_v18, %v877_v44 }
 0x25e   :  { %1925 = vtanh.f32 %v2468_v56 }
 0x268   :  { %v1926_v7 = vpop.eup %1925 }
 0x269   :  { %v881_v15 = vmul.f32 %v1926_v7, %v876_v20 }
 0x26b   :  { %v889_v19 = vpack.c.bf16 %v881_v15, %v881_v15 }
 0x26d   :  { %923 = vmatmul.mubr.bf16.vlgmr.msra.gmra.mrb[24].mxu0 %v889_v19  ;;  %964 = vmatmul.mubr.bf16.vlgmr.msra.gmra.mrb[24].mxu1 %v889_v19 }
 0x26e   :  { %1003 = vmatpush1.bf16.msra.mxu0 %v2188_v38  ;;  %1044 = vmatpush1.bf16.msra.mxu1 %v2190_v39 }
 0x26f   :  { %1004 = vmatprep.subr.bf16.mxu0 %v2194_v40  ;;  %1045 = vmatprep.subr.bf16.mxu1 %v2196_v41 }
 0x270   :  { %1034 = vmatprep.mubr.bf16.mxu0 %v2784_v45  ;;  %1075 = vmatprep.mubr.bf16.mxu1 %v2784_v45 }
 0x272   :  { %1005 = vmatpush1.bf16.msra.mxu0 %v2198_v42  ;;  %1046 = vmatpush1.bf16.msra.mxu1 %v2200_v43 }
 0x273   :  { %1006 = vmatprep.subr.bf16.mxu0 %v2210_v46  ;;  %1047 = vmatprep.subr.bf16.mxu1 %v2214_v47 }
 0x276   :  { %1007 = vmatpush1.bf16.msra.mxu0 %v2218_v49  ;;  %1048 = vmatpush1.bf16.msra.mxu1 %v2220_v50 }
 0x277   :  { %1008 = vmatprep.subr.bf16.mxu0 %v2224_v51  ;;  %1049 = vmatprep.subr.bf16.mxu1 %v2228_v52 }
 0x27a   :  { %1009 = vmatpush1.bf16.msra.mxu0 %v2230_v53  ;;  %1050 = vmatpush1.bf16.msra.mxu1 %v2232_v54 }
 0x27b   :  { %1010 = vmatprep.subr.bf16.mxu0 %v2244_v57  ;;  %1051 = vmatprep.subr.bf16.mxu1 %v2246_v58 }
 0x27e   :  { %1011 = vmatpush1.bf16.msra.mxu0 %v2252_v60  ;;  %1052 = vmatpush1.bf16.msra.mxu1 %v2254_v61 }
 0x27f   :  { %1012 = vmatprep.subr.bf16.mxu0 %v2258_v62  ;;  %1053 = vmatprep.subr.bf16.mxu1 %v2260_v63 }
 0x282   :  { %1013 = vmatpush1.bf16.msra.mxu0 %v2262_v1  ;;  %1054 = vmatpush1.bf16.msra.mxu1 %v2266_v2 }
 0x283   :  { %1014 = vmatprep.subr.bf16.mxu0 %v2276_v5  ;;  %1055 = vmatprep.subr.bf16.mxu1 %v2278_v6 }
 0x286   :  { %1015 = vmatpush1.bf16.msra.mxu0 %v2284_v8  ;;  %1056 = vmatpush1.bf16.msra.mxu1 %v2286_v9 }
 0x287   :  { %1016 = vmatprep.subr.bf16.mxu0 %v2290_v10  ;;  %1057 = vmatprep.subr.bf16.mxu1 %v2292_v11 }
 0x28a   :  { %1017 = vmatpush1.bf16.msra.mxu0 %v2296_v12  ;;  %1058 = vmatpush1.bf16.msra.mxu1 %v2298_v13 }
 0x28b   :  { %1114 = vmatprep.subr.bf16.mxu0 %v2184_v35  ;;  %1155 = vmatprep.subr.bf16.mxu1 %v2186_v36 }
 0x340   :  { %v924_v3 = vpop.f32.mrb[24].mxu0  ;;  %v965_v30 = vpop.f32.mrb[24].mxu1 }
 0x341   :  { %v972_v48 = vadd.f32 %v924_v3, %v2362_v55  ;;  %v974_v22 = vadd.f32 %v965_v30, %v2365_v59  ;;  %v926_v21 = vpop.f32.mrb[25].mxu0  ;;  %v967_v23 = vpop.f32.mrb[25].mxu1 }
 0x342   :  { %v973_v24 = vadd.f32 %v926_v21, %v2367_v4  ;;  %v975_v26 = vadd.f32 %v967_v23, %v2785_v25  ;;  %v928_v0 = vpop.f32.mrb[26].mxu0  ;;  %v969_v27 = vpop.f32.mrb[26].mxu1  ;;  %v2787_v23 = vld [vmem:[#allocation12_spill] sm:$0xff] }
 0x343   :  { %v976_v28 = vmul.f32 0.5, %v972_v48  ;;  %v929_v34 = vpop.f32.mrb[27].mxu0  ;;  %v970_v31 = vpop.f32.mrb[27].mxu1  ;;  %v2788_v0 = vld [vmem:[#allocation13_spill] sm:$0xff] }
 0x344   :  { %v980_v32 = vmul.f32 0.5, %v973_v24  ;;  %v985_v33 = vmul.f32 0.5, %v975_v26 }
 0x345   :  { %1927 = vtanh.f32 %v976_v28  ;;  %v2789_v28 = vld [vmem:[#allocation14_spill] sm:$0xff] }
 0x346   :  { %1929 = vtanh.f32 %v980_v32 }
 0x347   :  { %1931 = vtanh.f32 %v974_v22  ;;  %v2786_v22 = vld [vmem:[#allocation11_spill] sm:$0xff] }
 0x348   :  { %1933 = vtanh.f32 %v985_v33 }
 0x34f   :  { %v1928_v14 = vpop.eup %1927 }
 0x350   :  { %v1930_v55 = vpop.eup %1929  ;;  %v978_v16 = vmul.f32 0.5, %v1928_v14 }
 0x351   :  { %v982_v59 = vmul.f32 0.5, %v1930_v55  ;;  %v1932_v18 = vpop.eup %1931 }
 0x352   :  { %v979_v37 = vadd.f32 0.5, %v978_v16  ;;  %v1934_v20 = vpop.eup %1933 }
 0x353   :  { %v983_v4 = vadd.f32 0.5, %v982_v59  ;;  %v987_v7 = vmul.f32 0.5, %v1934_v20 }
 0x354   :  { %v990_v44 = vmul.f32 %v1932_v18, %v979_v37 }
 0x355   :  { %v989_v29 = vmul.f32 %v983_v4, %v2468_v56  ;;  %v988_v15 = vadd.f32 0.5, %v987_v7 }
 0x357   :  { %v2510_v17 = vadd.f32 %v990_v44, %v989_v29 }
 0x359   :  { %1935 = vtanh.f32 %v2510_v17 }
 0x363   :  { %v1936_v19 = vpop.eup %1935 }
 0x364   :  { %v993_v3 = vmul.f32 %v1936_v19, %v988_v15 }
 0x366   :  { %v1001_v30 = vpack.c.bf16 %v993_v3, %v993_v3 }
 0x368   :  { %1035 = vmatmul.mubr.bf16.vlgmr.msra.gmra.mrb[28].mxu0 %v1001_v30  ;;  %1076 = vmatmul.mubr.bf16.vlgmr.msra.gmra.mrb[28].mxu1 %v1001_v30 }
 0x369   :  { %1115 = vmatpush1.bf16.msra.mxu0 %v2188_v38  ;;  %1156 = vmatpush1.bf16.msra.mxu1 %v2190_v39 }
 0x36a   :  { %1116 = vmatprep.subr.bf16.mxu0 %v2194_v40  ;;  %1157 = vmatprep.subr.bf16.mxu1 %v2196_v41 }
 0x36b   :  { %1146 = vmatprep.mubr.bf16.mxu0 %v2784_v45  ;;  %1187 = vmatprep.mubr.bf16.mxu1 %v2784_v45 }
 0x36d   :  { %1117 = vmatpush1.bf16.msra.mxu0 %v2198_v42  ;;  %1158 = vmatpush1.bf16.msra.mxu1 %v2200_v43 }
 0x36e   :  { %1118 = vmatprep.subr.bf16.mxu0 %v2210_v46  ;;  %1159 = vmatprep.subr.bf16.mxu1 %v2214_v47 }
 0x371   :  { %1119 = vmatpush1.bf16.msra.mxu0 %v2218_v49  ;;  %1160 = vmatpush1.bf16.msra.mxu1 %v2220_v50 }
 0x372   :  { %1120 = vmatprep.subr.bf16.mxu0 %v2224_v51  ;;  %1161 = vmatprep.subr.bf16.mxu1 %v2228_v52 }
 0x375   :  { %1121 = vmatpush1.bf16.msra.mxu0 %v2230_v53  ;;  %1162 = vmatpush1.bf16.msra.mxu1 %v2232_v54 }
 0x376   :  { %1122 = vmatprep.subr.bf16.mxu0 %v2244_v57  ;;  %1163 = vmatprep.subr.bf16.mxu1 %v2246_v58 }
 0x379   :  { %1123 = vmatpush1.bf16.msra.mxu0 %v2252_v60  ;;  %1164 = vmatpush1.bf16.msra.mxu1 %v2254_v61 }
 0x37a   :  { %1124 = vmatprep.subr.bf16.mxu0 %v2258_v62  ;;  %1165 = vmatprep.subr.bf16.mxu1 %v2260_v63 }
 0x37d   :  { %1125 = vmatpush1.bf16.msra.mxu0 %v2262_v1  ;;  %1166 = vmatpush1.bf16.msra.mxu1 %v2266_v2 }
 0x37e   :  { %1126 = vmatprep.subr.bf16.mxu0 %v2276_v5  ;;  %1167 = vmatprep.subr.bf16.mxu1 %v2278_v6 }
 0x381   :  { %1127 = vmatpush1.bf16.msra.mxu0 %v2284_v8  ;;  %1168 = vmatpush1.bf16.msra.mxu1 %v2286_v9 }
 0x382   :  { %1128 = vmatprep.subr.bf16.mxu0 %v2290_v10  ;;  %1169 = vmatprep.subr.bf16.mxu1 %v2292_v11 }
 0x385   :  { %1129 = vmatpush1.bf16.msra.mxu0 %v2296_v12  ;;  %1170 = vmatpush1.bf16.msra.mxu1 %v2298_v13 }
 0x386   :  { %1226 = vmatprep.subr.bf16.mxu0 %v2184_v35  ;;  %1267 = vmatprep.subr.bf16.mxu1 %v2186_v36 }
 0x43b   :  { %v1036_v56 = vpop.f32.mrb[28].mxu0  ;;  %v1077_v48 = vpop.f32.mrb[28].mxu1 }
 0x43c   :  { %v1084_v21 = vadd.f32 %v1036_v56, %v2786_v22  ;;  %v1086_v24 = vadd.f32 %v1077_v48, %v2787_v23  ;;  %v1038_v25 = vpop.f32.mrb[29].mxu0  ;;  %v1079_v26 = vpop.f32.mrb[29].mxu1 }
 0x43d   :  { %v1085_v27 = vadd.f32 %v1038_v25, %v2788_v0  ;;  %v1087_v34 = vadd.f32 %v1079_v26, %v2789_v28  ;;  %v1040_v31 = vpop.f32.mrb[30].mxu0  ;;  %v1081_v32 = vpop.f32.mrb[30].mxu1 }
 0x43e   :  { %v1088_v33 = vmul.f32 0.5, %v1084_v21  ;;  %v1041_v14 = vpop.f32.mrb[31].mxu0  ;;  %v1082_v55 = vpop.f32.mrb[31].mxu1 }
 0x43f   :  { %v1092_v35 = vmul.f32 0.5, %v1085_v27  ;;  %v1097_v36 = vmul.f32 0.5, %v1087_v34 }
 0x440   :  { %1937 = vtanh.f32 %v1088_v33 }
 0x441   :  { %1939 = vtanh.f32 %v1092_v35 }
 0x442   :  { %1941 = vtanh.f32 %v1086_v24 }
 0x443   :  { %1943 = vtanh.f32 %v1097_v36 }
 0x44a   :  { %v1938_v16 = vpop.eup %1937 }
 0x44b   :  { %v1940_v59 = vpop.eup %1939  ;;  %v1090_v37 = vmul.f32 0.5, %v1938_v16 }
 0x44c   :  { %v1094_v18 = vmul.f32 0.5, %v1940_v59  ;;  %v1942_v44 = vpop.eup %1941 }
 0x44d   :  { %v1091_v4 = vadd.f32 0.5, %v1090_v37  ;;  %v1944_v19 = vpop.eup %1943 }
 0x44e   :  { %v1095_v29 = vadd.f32 0.5, %v1094_v18  ;;  %v1099_v3 = vmul.f32 0.5, %v1944_v19  ;;  %v2615_v19 = vld [vmem:[#allocation5 + $0x20] ss:$16 sps:$4 sm:$0xff]  }
 0x44f   :  { %v1102_v20 = vmul.f32 %v1942_v44, %v1091_v4 }
 0x450   :  { %v1101_v7 = vmul.f32 %v1095_v29, %v2510_v17  ;;  %v1100_v30 = vadd.f32 0.5, %v1099_v3  ;;  %v2601_v29 = vld [vmem:[#allocation5] ss:$16 sps:$4 sm:$0xff]   ;;  %v2618_v3 = vld [vmem:[#allocation5 + $0x28] ss:$16 sps:$4 sm:$0xff]  }
 0x452   :  { %v2552_v15 = vadd.f32 %v1102_v20, %v1101_v7  ;;  %v2604_v20 = vld [vmem:[#allocation5 + $0x8] ss:$16 sps:$4 sm:$0xff]   ;;  %v2607_v7 = vld [vmem:[#allocation5 + $0x24] ss:$16 sps:$4 sm:$0xff]  }
 0x454   :  { %1945 = vtanh.f32 %v2552_v15 }
 0x45e   :  { %v1946_v56 = vpop.eup %1945 }
 0x45f   :  { %v1105_v48 = vmul.f32 %v1946_v56, %v1100_v30  ;;  %v2621_v30 = vld [vmem:[#allocation5 + $0x44] ss:$16 sps:$4 sm:$0xff]   ;;  %v2624_v56 = vld [vmem:[#allocation5 + $0x4c] ss:$16 sps:$4 sm:$0xff]  }
 0x461   :  { %v1113_v22 = vpack.c.bf16 %v1105_v48, %v1105_v48  ;;  %v2627_v48 = vld [vmem:[#allocation5 + $0x40] ss:$16 sps:$4 sm:$0xff]  }
 0x463   :  { %1147 = vmatmul.mubr.bf16.vlgmr.msra.gmra.mrb[32].mxu0 %v1113_v22  ;;  %1188 = vmatmul.mubr.bf16.vlgmr.msra.gmra.mrb[32].mxu1 %v1113_v22  ;;  %v2630_v22 = vld [vmem:[#allocation5 + $0x48] ss:$16 sps:$4 sm:$0xff]  }
 0x464   :  { %1227 = vmatpush1.bf16.msra.mxu0 %v2188_v38  ;;  %1268 = vmatpush1.bf16.msra.mxu1 %v2190_v39  ;;  %v2587_v38 = vld [vmem:[#allocation5 + $0x4] ss:$16 sps:$4 sm:$0xff]   ;;  %v2590_v39 = vld [vmem:[#allocation5 + $0xc] ss:$16 sps:$4 sm:$0xff]  }
 0x465   :  { %1228 = vmatprep.subr.bf16.mxu0 %v2194_v40  ;;  %1269 = vmatprep.subr.bf16.mxu1 %v2196_v41 }
 0x466   :  { %1258 = vmatprep.mubr.bf16.mxu0 %v2784_v45  ;;  %1299 = vmatprep.mubr.bf16.mxu1 %v2784_v45 }
 0x468   :  { %1229 = vmatpush1.bf16.msra.mxu0 %v2198_v42  ;;  %1270 = vmatpush1.bf16.msra.mxu1 %v2200_v43  ;;  %v2790_v42 = vld [vmem:[#allocation15_spill] sm:$0xff] }
 0x469   :  { %1230 = vmatprep.subr.bf16.mxu0 %v2210_v46  ;;  %1271 = vmatprep.subr.bf16.mxu1 %v2214_v47  ;;  %v2791_v46 = vld [vmem:[#allocation16_spill] sm:$0xff] }
 0x46c   :  { %1231 = vmatpush1.bf16.msra.mxu0 %v2218_v49  ;;  %1272 = vmatpush1.bf16.msra.mxu1 %v2220_v50 }
 0x46d   :  { %1232 = vmatprep.subr.bf16.mxu0 %v2224_v51  ;;  %1273 = vmatprep.subr.bf16.mxu1 %v2228_v52  ;;  %v2792_v51 = vld [vmem:[#allocation17_spill] sm:$0xff] }
 0x470   :  { %1233 = vmatpush1.bf16.msra.mxu0 %v2230_v53  ;;  %1274 = vmatpush1.bf16.msra.mxu1 %v2232_v54  ;;  %v2793_v53 = vld [vmem:[#allocation18_spill] sm:$0xff] }
 0x471   :  { %1234 = vmatprep.subr.bf16.mxu0 %v2244_v57  ;;  %1275 = vmatprep.subr.bf16.mxu1 %v2246_v58 }
 0x474   :  { %1235 = vmatpush1.bf16.msra.mxu0 %v2252_v60  ;;  %1276 = vmatpush1.bf16.msra.mxu1 %v2254_v61 }
 0x475   :  { %1236 = vmatprep.subr.bf16.mxu0 %v2258_v62  ;;  %1277 = vmatprep.subr.bf16.mxu1 %v2260_v63 }
 0x478   :  { %1237 = vmatpush1.bf16.msra.mxu0 %v2262_v1  ;;  %1278 = vmatpush1.bf16.msra.mxu1 %v2266_v2 }
 0x479   :  { %1238 = vmatprep.subr.bf16.mxu0 %v2276_v5  ;;  %1279 = vmatprep.subr.bf16.mxu1 %v2278_v6 }
 0x47c   :  { %1239 = vmatpush1.bf16.msra.mxu0 %v2284_v8  ;;  %1280 = vmatpush1.bf16.msra.mxu1 %v2286_v9 }
 0x47d   :  { %1240 = vmatprep.subr.bf16.mxu0 %v2290_v10  ;;  %1281 = vmatprep.subr.bf16.mxu1 %v2292_v11 }
 0x480   :  { %1241 = vmatpush1.bf16.msra.mxu0 %v2296_v12  ;;  %1282 = vmatpush1.bf16.msra.mxu1 %v2298_v13 }
 0x481   :  { %1338 = vmatprep.subr.bf16.mxu0 %v2587_v38  ;;  %1379 = vmatprep.subr.bf16.mxu1 %v2590_v39 }
 0x536   :  { %v1148_v40 = vpop.f32.mrb[32].mxu0  ;;  %v1189_v41 = vpop.f32.mrb[32].mxu1 }
 0x537   :  { %v1196_v43 = vadd.f32 %v1148_v40, %v2790_v42  ;;  %v1198_v47 = vadd.f32 %v1189_v41, %v2791_v46  ;;  %v1150_v49 = vpop.f32.mrb[33].mxu0  ;;  %v1191_v50 = vpop.f32.mrb[33].mxu1  ;;  %v2633_v40 = vld [vmem:[#allocation5 + $0x64] ss:$16 sps:$4 sm:$0xff]   ;;  %v2636_v41 = vld [vmem:[#allocation5 + $0x6c] ss:$16 sps:$4 sm:$0xff]  }
 0x538   :  { %v1197_v52 = vadd.f32 %v1150_v49, %v2792_v51  ;;  %v1199_v54 = vadd.f32 %v1191_v50, %v2793_v53  ;;  %v1152_v17 = vpop.f32.mrb[34].mxu0  ;;  %v1193_v21 = vpop.f32.mrb[34].mxu1  ;;  %v2639_v42 = vld [vmem:[#allocation5 + $0x60] ss:$16 sps:$4 sm:$0xff]  }
 0x539   :  { %v1200_v23 = vmul.f32 0.5, %v1196_v43  ;;  %v1153_v24 = vpop.f32.mrb[35].mxu0  ;;  %v1194_v25 = vpop.f32.mrb[35].mxu1  ;;  %v2642_v43 = vld [vmem:[#allocation5 + $0x68] ss:$16 sps:$4 sm:$0xff]  }
 0x53a   :  { %v1204_v26 = vmul.f32 0.5, %v1197_v52  ;;  %v1209_v0 = vmul.f32 0.5, %v1199_v54 }
 0x53b   :  { %1947 = vtanh.f32 %v1200_v23 }
 0x53c   :  { %1949 = vtanh.f32 %v1204_v26 }
 0x53d   :  { %1951 = vtanh.f32 %v1198_v47 }
 0x53e   :  { %1953 = vtanh.f32 %v1209_v0 }
 0x545   :  { %v1948_v27 = vpop.eup %1947 }
 0x546   :  { %v1950_v28 = vpop.eup %1949  ;;  %v1202_v34 = vmul.f32 0.5, %v1948_v27 }
 0x547   :  { %v1206_v31 = vmul.f32 0.5, %v1950_v28  ;;  %v1952_v33 = vpop.eup %1951 }
 0x548   :  { %v1203_v32 = vadd.f32 0.5, %v1202_v34  ;;  %v1954_v16 = vpop.eup %1953  ;;  %v2004_v34 = vld [vmem:[#allocation5 + $0x8c] ss:$16 sps:$4 sm:$0xff]  }
 0x549   :  { %v1207_v14 = vadd.f32 0.5, %v1206_v31  ;;  %v1211_v59 = vmul.f32 0.5, %v1954_v16  ;;  %v2005_v31 = vld [vmem:[#allocation5 + $0x80] ss:$16 sps:$4 sm:$0xff]   ;;  %v2012_v16 = vld [vmem:[#allocation5 + $0xcc] ss:$16 sps:$4 sm:$0xff]  }
 0x54a   :  { %v1214_v55 = vmul.f32 %v1952_v33, %v1203_v32  ;;  %v2006_v32 = vld [vmem:[#allocation5 + $0x88] ss:$16 sps:$4 sm:$0xff]   ;;  %v2007_v33 = vld [vmem:[#allocation5 + $0xa4] ss:$16 sps:$4 sm:$0xff]  }
 0x54b   :  { %v1213_v35 = vmul.f32 %v1207_v14, %v2552_v15  ;;  %v1212_v37 = vadd.f32 0.5, %v1211_v59  ;;  %v2610_v15 = vld [vmem:[#allocation5 + $0x2c] ss:$16 sps:$4 sm:$0xff]   ;;  %v2013_v59 = vld [vmem:[#allocation5 + $0xc0] ss:$16 sps:$4 sm:$0xff]  }
 0x54c   :  { %v2008_v14 = vld [vmem:[#allocation5 + $0xac] ss:$16 sps:$4 sm:$0xff]  }
 0x54d   :  { %v2598_v36 = vadd.f32 %v1214_v55, %v1213_v35  ;;  %v2009_v55 = vld [vmem:[#allocation5 + $0xa0] ss:$16 sps:$4 sm:$0xff]   ;;  %v2010_v35 = vld [vmem:[#allocation5 + $0xa8] ss:$16 sps:$4 sm:$0xff]  }
 0x54f   :  { %1955 = vtanh.f32 %v2598_v36 }
 0x559   :  { %v1956_v18 = vpop.eup %1955 }
 0x55a   :  { %v1217_v4 = vmul.f32 %v1956_v18, %v1212_v37  ;;  %v2014_v37 = vld [vmem:[#allocation5 + $0xc8] ss:$16 sps:$4 sm:$0xff]   ;;  %v2015_v18 = vld [vmem:[#allocation5 + $0xe4] ss:$16 sps:$4 sm:$0xff]  }
 0x55c   :  { %v1225_v44 = vpack.c.bf16 %v1217_v4, %v1217_v4  ;;  %v2016_v4 = vld [vmem:[#allocation5 + $0xec] ss:$16 sps:$4 sm:$0xff]  }
 0x55e   :  { %1259 = vmatmul.mubr.bf16.vlgmr.msra.gmra.mrb[36].mxu0 %v1225_v44  ;;  %1300 = vmatmul.mubr.bf16.vlgmr.msra.gmra.mrb[36].mxu1 %v1225_v44  ;;  %v2017_v44 = vld [vmem:[#allocation5 + $0xe0] ss:$16 sps:$4 sm:$0xff]  }
 0x55f   :  { %1339 = vmatpush1.bf16.msra.mxu0 %v2601_v29  ;;  %1380 = vmatpush1.bf16.msra.mxu1 %v2604_v20 }
 0x560   :  { %1340 = vmatprep.subr.bf16.mxu0 %v2607_v7  ;;  %1381 = vmatprep.subr.bf16.mxu1 %v2610_v15 }
 0x561   :  { %1370 = vmatprep.mubr.bf16.mxu0 %v2784_v45  ;;  %1411 = vmatprep.mubr.bf16.mxu1 %v2784_v45 }
 0x563   :  { %1341 = vmatpush1.bf16.msra.mxu0 %v2615_v19  ;;  %1382 = vmatpush1.bf16.msra.mxu1 %v2618_v3 }
 0x564   :  { %1342 = vmatprep.subr.bf16.mxu0 %v2621_v30  ;;  %1383 = vmatprep.subr.bf16.mxu1 %v2624_v56 }
 0x567   :  { %1343 = vmatpush1.bf16.msra.mxu0 %v2627_v48  ;;  %1384 = vmatpush1.bf16.msra.mxu1 %v2630_v22 }
 0x568   :  { %1344 = vmatprep.subr.bf16.mxu0 %v2633_v40  ;;  %1385 = vmatprep.subr.bf16.mxu1 %v2636_v41 }
 0x56b   :  { %1345 = vmatpush1.bf16.msra.mxu0 %v2639_v42  ;;  %1386 = vmatpush1.bf16.msra.mxu1 %v2642_v43 }
 0x56c   :  { %1346 = vmatprep.subr.bf16.mxu0 %v2244_v57  ;;  %1387 = vmatprep.subr.bf16.mxu1 %v2246_v58 }
 0x56f   :  { %1347 = vmatpush1.bf16.msra.mxu0 %v2252_v60  ;;  %1388 = vmatpush1.bf16.msra.mxu1 %v2254_v61  ;;  %v2794_v60 = vld [vmem:[#allocation19_spill] sm:$0xff] }
 0x570   :  { %1348 = vmatprep.subr.bf16.mxu0 %v2258_v62  ;;  %1389 = vmatprep.subr.bf16.mxu1 %v2260_v63  ;;  %v2795_v62 = vld [vmem:[#allocation20_spill] sm:$0xff] }
 0x573   :  { %1349 = vmatpush1.bf16.msra.mxu0 %v2262_v1  ;;  %1390 = vmatpush1.bf16.msra.mxu1 %v2266_v2 }
 0x574   :  { %1350 = vmatprep.subr.bf16.mxu0 %v2276_v5  ;;  %1391 = vmatprep.subr.bf16.mxu1 %v2278_v6  ;;  %v2796_v5 = vld [vmem:[#allocation21_spill] sm:$0xff] }
 0x577   :  { %1351 = vmatpush1.bf16.msra.mxu0 %v2284_v8  ;;  %1392 = vmatpush1.bf16.msra.mxu1 %v2286_v9  ;;  %v2797_v8 = vld [vmem:[#allocation22_spill] sm:$0xff] }
 0x578   :  { %1352 = vmatprep.subr.bf16.mxu0 %v2290_v10  ;;  %1393 = vmatprep.subr.bf16.mxu1 %v2292_v11 }
 0x57b   :  { %1353 = vmatpush1.bf16.msra.mxu0 %v2296_v12  ;;  %1394 = vmatpush1.bf16.msra.mxu1 %v2298_v13 }
 0x57c   :  { %1450 = vmatprep.subr.bf16.mxu0 %v2587_v38  ;;  %1491 = vmatprep.subr.bf16.mxu1 %v2590_v39 }
 0x631   :  { %v1260_v57 = vpop.f32.mrb[36].mxu0  ;;  %v1301_v58 = vpop.f32.mrb[36].mxu1 }
 0x632   :  { %v1308_v61 = vadd.f32 %v1260_v57, %v2794_v60  ;;  %v1310_v63 = vadd.f32 %v1301_v58, %v2795_v62  ;;  %v1262_v1 = vpop.f32.mrb[37].mxu0  ;;  %v1303_v2 = vpop.f32.mrb[37].mxu1 }
 0x633   :  { %v1309_v6 = vadd.f32 %v1262_v1, %v2796_v5  ;;  %v1311_v9 = vadd.f32 %v1303_v2, %v2797_v8  ;;  %v1264_v10 = vpop.f32.mrb[38].mxu0  ;;  %v1305_v11 = vpop.f32.mrb[38].mxu1 }
 0x634   :  { %v1312_v12 = vmul.f32 0.5, %v1308_v61  ;;  %v1265_v13 = vpop.f32.mrb[39].mxu0  ;;  %v1306_v46 = vpop.f32.mrb[39].mxu1 }
 0x635   :  { %v1316_v38 = vmul.f32 0.5, %v1309_v6  ;;  %v1321_v39 = vmul.f32 0.5, %v1311_v9 }
 0x636   :  { %1957 = vtanh.f32 %v1312_v12 }
 0x637   :  { %1959 = vtanh.f32 %v1316_v38 }
 0x638   :  { %1961 = vtanh.f32 %v1310_v63 }
 0x639   :  { %1963 = vtanh.f32 %v1321_v39 }
 0x640   :  { %v1958_v47 = vpop.eup %1957 }
 0x641   :  { %v1960_v49 = vpop.eup %1959  ;;  %v1314_v50 = vmul.f32 0.5, %v1958_v47 }
 0x642   :  { %v1318_v51 = vmul.f32 0.5, %v1960_v49  ;;  %v1962_v53 = vpop.eup %1961 }
 0x643   :  { %v1315_v52 = vadd.f32 0.5, %v1314_v50  ;;  %v1964_v24 = vpop.eup %1963 }
 0x644   :  { %v1319_v54 = vadd.f32 0.5, %v1318_v51  ;;  %v1323_v25 = vmul.f32 0.5, %v1964_v24  ;;  %v1554_v51 = vld [vmem:[%s2758_s4] sm:$0xff] }
 0x645   :  { %v1326_v17 = vmul.f32 %v1962_v53, %v1315_v52  ;;  %v1555_v52 = vld [vmem:[%s2758_s4 + $0x8] sm:$0xff]  ;;  %v1558_v24 = vld [vmem:[%s2758_s4 + $0x20] sm:$0xff] }
 0x646   :  { %v1325_v21 = vmul.f32 %v1319_v54, %v2598_v36  ;;  %v1324_v26 = vadd.f32 0.5, %v1323_v25  ;;  %v2011_v36 = vld [vmem:[#allocation5 + $0xc4] ss:$16 sps:$4 sm:$0xff]   ;;  %v1779_v53 = vpack.c.bf16 %v1555_v52, %v1554_v51  ;;  %v2095_v54 = vmov 0.0|0.0   ;;  %v1559_v25 = vld [vmem:[%s2758_s4 + $0x28] sm:$0xff] }
 0x648   :  { %v2668_v23 = vadd.f32 %v1326_v17, %v1325_v21  ;;  %v1556_v17 = vld [vmem:[%s2758_s4 + $0x10] sm:$0xff]  ;;  %v1557_v21 = vld [vmem:[%s2758_s4 + $0x18] sm:$0xff] }
 0x64a   :  { %1965 = vtanh.f32 %v2668_v23 }
 0x654   :  { %v1966_v0 = vpop.eup %1965 }
 0x655   :  { %v1329_v27 = vmul.f32 %v1966_v0, %v1324_v26  ;;  %v1785_v26 = vpack.c.bf16 %v1559_v25, %v1558_v24  ;;  %v1560_v0 = vld [vmem:[%s2758_s4 + $0x30] sm:$0xff] }
 0x657   :  { %v1337_v28 = vpack.c.bf16 %v1329_v27, %v1329_v27  ;;  %v1561_v27 = vld [vmem:[%s2758_s4 + $0x38] sm:$0xff] }
 0x659   :  { %1371 = vmatmul.mubr.bf16.vlgmr.msra.gmra.mrb[40].mxu0 %v1337_v28  ;;  %1412 = vmatmul.mubr.bf16.vlgmr.msra.gmra.mrb[40].mxu1 %v1337_v28  ;;  %v1788_v28 = vpack.c.bf16 %v1561_v27, %v1560_v0 }
 0x65a   :  { %1451 = vmatpush1.bf16.msra.mxu0 %v2601_v29  ;;  %1492 = vmatpush1.bf16.msra.mxu1 %v2604_v20  ;;  %v2018_v29 = vld [vmem:[#allocation5 + $0xe8] ss:$16 sps:$4 sm:$0xff]  }
 0x65b   :  { %1452 = vmatprep.subr.bf16.mxu0 %v2607_v7  ;;  %1493 = vmatprep.subr.bf16.mxu1 %v2610_v15  ;;  %v2798_v15 = vld [vmem:[#allocation23_spill] sm:$0xff] }
 0x65c   :  { %1482 = vmatprep.mubr.bf16.mxu0 %v2784_v45  ;;  %1523 = vmatprep.mubr.bf16.mxu1 %v2784_v45  ;;  %v2003_v45 = vld [vmem:[#allocation5 + $0x84] ss:$16 sps:$4 sm:$0xff]  }
 0x65e   :  { %1453 = vmatpush1.bf16.msra.mxu0 %v2615_v19  ;;  %1494 = vmatpush1.bf16.msra.mxu1 %v2618_v3  ;;  %v2799_v3 = vld [vmem:[#allocation24_spill] sm:$0xff] }
 0x65f   :  { %1454 = vmatprep.subr.bf16.mxu0 %v2621_v30  ;;  %1495 = vmatprep.subr.bf16.mxu1 %v2624_v56 }
 0x662   :  { %1455 = vmatpush1.bf16.msra.mxu0 %v2627_v48  ;;  %1496 = vmatpush1.bf16.msra.mxu1 %v2630_v22  ;;  %v2800_v22 = vld [vmem:[#allocation25_spill] sm:$0xff] }
 0x663   :  { %1456 = vmatprep.subr.bf16.mxu0 %v2633_v40  ;;  %1497 = vmatprep.subr.bf16.mxu1 %v2636_v41  ;;  %v2801_v41 = vld [vmem:[#allocation26_spill] sm:$0xff] }
 0x666   :  { %1457 = vmatpush1.bf16.msra.mxu0 %v2639_v42  ;;  %1498 = vmatpush1.bf16.msra.mxu1 %v2642_v43 }
 0x667   :  { %1458 = vmatprep.subr.bf16.mxu0 %v2003_v45  ;;  %1499 = vmatprep.subr.bf16.mxu1 %v2004_v34  ;;  %v1562_v45 = vld [vmem:[%s2758_s4 + $0x40] sm:$0xff]  ;;  %v1563_v34 = vld [vmem:[%s2758_s4 + $0x48] sm:$0xff] }
 0x66a   :  { %1459 = vmatpush1.bf16.msra.mxu0 %v2005_v31  ;;  %1500 = vmatpush1.bf16.msra.mxu1 %v2006_v32  ;;  %v1791_v31 = vpack.c.bf16 %v1563_v34, %v1562_v45  ;;  %v1564_v32 = vld [vmem:[%s2758_s4 + $0x50] sm:$0xff] }
 0x66b   :  { %1460 = vmatprep.subr.bf16.mxu0 %v2007_v33  ;;  %1501 = vmatprep.subr.bf16.mxu1 %v2008_v14  ;;  %v1565_v33 = vld [vmem:[%s2758_s4 + $0x58] sm:$0xff] }
 0x66c   :  { %v1794_v14 = vpack.c.bf16 %v1565_v33, %v1564_v32 }
 0x66e   :  { %1461 = vmatpush1.bf16.msra.mxu0 %v2009_v55  ;;  %1502 = vmatpush1.bf16.msra.mxu1 %v2010_v35  ;;  %v1566_v55 = vld [vmem:[%s2758_s4 + $0x60] sm:$0xff]  ;;  %v1567_v35 = vld [vmem:[%s2758_s4 + $0x68] sm:$0xff] }
 0x66f   :  { %1462 = vmatprep.subr.bf16.mxu0 %v2011_v36  ;;  %1503 = vmatprep.subr.bf16.mxu1 %v2012_v16  ;;  %v1797_v36 = vpack.c.bf16 %v1567_v35, %v1566_v55  ;;  %v1568_v16 = vld [vmem:[%s2758_s4 + $0x70] sm:$0xff] }
 0x672   :  { %1463 = vmatpush1.bf16.msra.mxu0 %v2013_v59  ;;  %1504 = vmatpush1.bf16.msra.mxu1 %v2014_v37  ;;  %v1569_v59 = vld [vmem:[%s2758_s4 + $0x78] sm:$0xff] }
 0x673   :  { %1464 = vmatprep.subr.bf16.mxu0 %v2015_v18  ;;  %1505 = vmatprep.subr.bf16.mxu1 %v2016_v4  ;;  %v1800_v37 = vpack.c.bf16 %v1569_v59, %v1568_v16  ;;  %v2097_v18 = vmov 0.0  }
 0x676   :  { %1465 = vmatpush1.bf16.msra.mxu0 %v2017_v44  ;;  %1506 = vmatpush1.bf16.msra.mxu1 %v2018_v29  ;;  %v2802_v29 = vld [vmem:[#allocation27_spill] sm:$0xff] }
 0x677   :  { %1778 = vmatprep.subr.bf16.mxu0 %v2095_v54 }
 0x72c   :  { %v1372_v20 = vpop.f32.mrb[40].mxu0  ;;  %v1413_v7 = vpop.f32.mrb[40].mxu1 }
 0x72d   :  { %v1420_v19 = vadd.f32 %v1372_v20, %v2798_v15  ;;  %v1422_v30 = vadd.f32 %v1413_v7, %v2799_v3  ;;  %v1374_v56 = vpop.f32.mrb[41].mxu0  ;;  %v1415_v48 = vpop.f32.mrb[41].mxu1  ;;  %v2803_v7 = vld [vmem:[#allocation28_spill] sm:$0xff] }
 0x72e   :  { %v1421_v40 = vadd.f32 %v1374_v56, %v2800_v22  ;;  %v1423_v42 = vadd.f32 %v1415_v48, %v2801_v41  ;;  %v1376_v43 = vpop.f32.mrb[42].mxu0  ;;  %v1417_v57 = vpop.f32.mrb[42].mxu1  ;;  %v2805_v48 = vld [vmem:[#allocation30_spill] sm:$0xff] }
 0x72f   :  { %v1424_v58 = vmul.f32 0.5, %v1420_v19  ;;  %v1377_v60 = vpop.f32.mrb[43].mxu0  ;;  %v1418_v61 = vpop.f32.mrb[43].mxu1 }
 0x730   :  { %v1428_v62 = vmul.f32 0.5, %v1421_v40  ;;  %v1433_v63 = vmul.f32 0.5, %v1423_v42 }
 0x731   :  { %1967 = vtanh.f32 %v1424_v58 }
 0x732   :  { %1969 = vtanh.f32 %v1428_v62 }
 0x733   :  { %1971 = vtanh.f32 %v1422_v30  ;;  %v2804_v30 = vld [vmem:[#allocation29_spill] sm:$0xff] }
 0x734   :  { %1973 = vtanh.f32 %v1433_v63 }
 0x73b   :  { %v1968_v1 = vpop.eup %1967 }
 0x73c   :  { %v1970_v2 = vpop.eup %1969  ;;  %v1426_v5 = vmul.f32 0.5, %v1968_v1 }
 0x73d   :  { %v1430_v6 = vmul.f32 0.5, %v1970_v2  ;;  %v1972_v9 = vpop.eup %1971 }
 0x73e   :  { %v1427_v8 = vadd.f32 0.5, %v1426_v5  ;;  %v1974_v46 = vpop.eup %1973 }
 0x73f   :  { %v1431_v10 = vadd.f32 0.5, %v1430_v6  ;;  %v1435_v38 = vmul.f32 0.5, %v1974_v46 }
 0x740   :  { %v1438_v11 = vmul.f32 %v1972_v9, %v1427_v8 }
 0x741   :  { %v1437_v12 = vmul.f32 %v1431_v10, %v2668_v23  ;;  %v1436_v39 = vadd.f32 0.5, %v1435_v38  ;;  %v1782_v23 = vpack.c.bf16 %v1557_v21, %v1556_v17 }
 0x743   :  { %v2692_v13 = vadd.f32 %v1438_v11, %v1437_v12 }
 0x745   :  { %1975 = vtanh.f32 %v2692_v13 }
 0x74f   :  { %v1976_v47 = vpop.eup %1975 }
 0x750   :  { %v1441_v49 = vmul.f32 %v1976_v47, %v1436_v39  ;;  %v1725_v47 = vld [vmem:[%s2759_s5] ss:$0 sm:$0xff] }
 0x752   :  { %v1449_v50 = vpack.c.bf16 %v1441_v49, %v1441_v49 }
 0x754   :  { %1483 = vmatmul.mubr.bf16.vlgmr.msra.gmra.mrb[44].mxu0 %v1449_v50  ;;  %1524 = vmatmul.mubr.bf16.vlgmr.msra.gmra.mrb[44].mxu1 %v1449_v50 }
 0x755   :  { %1780 = vmatpush3.bf16.msra.mxu0 %v1779_v53  ;;  %1775 = vmatprep.mubr.msk.f32.mxu0 %vm2096_vm0, %v2097_v18 }
 0x756   :  { %1781 = vmatprep.subr.bf16.mxu0 %v2095_v54 }
 0x759   :  { %1783 = vmatpush3.bf16.msra.mxu0 %v1782_v23 }
 0x75a   :  { %1784 = vmatprep.subr.bf16.mxu0 %v2095_v54 }
 0x75d   :  { %1786 = vmatpush3.bf16.msra.mxu0 %v1785_v26 }
 0x75e   :  { %1787 = vmatprep.subr.bf16.mxu0 %v2095_v54 }
 0x761   :  { %1789 = vmatpush3.bf16.msra.mxu0 %v1788_v28 }
 0x762   :  { %1790 = vmatprep.subr.bf16.mxu0 %v2095_v54 }
 0x765   :  { %1792 = vmatpush3.bf16.msra.mxu0 %v1791_v31 }
 0x766   :  { %1793 = vmatprep.subr.bf16.mxu0 %v2095_v54 }
 0x769   :  { %1795 = vmatpush3.bf16.msra.mxu0 %v1794_v14 }
 0x76a   :  { %1796 = vmatprep.subr.bf16.mxu0 %v2095_v54 }
 0x76d   :  { %1798 = vmatpush3.bf16.msra.mxu0 %v1797_v36 }
 0x76e   :  { %1799 = vmatprep.subr.bf16.mxu0 %v2095_v54 }
 0x771   :  { %1801 = vmatpush3.bf16.msra.mxu0 %v1800_v37 }
 0x827   :  { %v1484_v4 = vpop.f32.mrb[44].mxu0  ;;  %v1525_v44 = vpop.f32.mrb[44].mxu1 }
 0x828   :  { %v1532_v20 = vadd.f32 %v1484_v4, %v2802_v29  ;;  %v1534_v15 = vadd.f32 %v1525_v44, %v2803_v7  ;;  %v1486_v19 = vpop.f32.mrb[45].mxu0  ;;  %v1527_v3 = vpop.f32.mrb[45].mxu1 }
 0x829   :  { %v1533_v56 = vadd.f32 %v1486_v19, %v2804_v30  ;;  %v1535_v22 = vadd.f32 %v1527_v3, %v2805_v48  ;;  %v1488_v40 = vpop.f32.mrb[46].mxu0  ;;  %v1529_v41 = vpop.f32.mrb[46].mxu1 }
 0x82a   :  { %v1536_v42 = vmul.f32 0.5, %v1532_v20  ;;  %v1489_v43 = vpop.f32.mrb[47].mxu0  ;;  %v1530_v57 = vpop.f32.mrb[47].mxu1 }
 0x82b   :  { %v1540_v58 = vmul.f32 0.5, %v1533_v56  ;;  %v1545_v60 = vmul.f32 0.5, %v1535_v22 }
 0x82c   :  { %1977 = vtanh.f32 %v1536_v42 }
 0x82d   :  { %1979 = vtanh.f32 %v1540_v58 }
 0x82e   :  { %1981 = vtanh.f32 %v1534_v15 }
 0x82f   :  { %1983 = vtanh.f32 %v1545_v60 }
 0x836   :  { %v1978_v61 = vpop.eup %1977 }
 0x837   :  { %v1980_v62 = vpop.eup %1979  ;;  %v1538_v63 = vmul.f32 0.5, %v1978_v61 }
 0x838   :  { %v1542_v1 = vmul.f32 0.5, %v1980_v62  ;;  %v1982_v5 = vpop.eup %1981 }
 0x839   :  { %v1539_v2 = vadd.f32 0.5, %v1538_v63  ;;  %v1984_v11 = vpop.eup %1983 }
 0x83a   :  { %v1543_v6 = vadd.f32 0.5, %v1542_v1  ;;  %v1547_v12 = vmul.f32 0.5, %v1984_v11 }
 0x83b   :  { %v1550_v8 = vmul.f32 %v1982_v5, %v1539_v2 }
 0x83c   :  { %v1549_v9 = vmul.f32 %v1543_v6, %v2692_v13  ;;  %v1548_v46 = vadd.f32 0.5, %v1547_v12 }
 0x83e   :  { %v1551_v10 = vadd.f32 %v1550_v8, %v1549_v9 }
 0x840   :  { %1985 = vtanh.f32 %v1551_v10 }
 0x84a   :  { %v1986_v38 = vpop.eup %1985 }
 0x84b   :  { %v1553_v39 = vmul.f32 %v1986_v38, %v1548_v46 }
 0x84d   :  { %1776 = vmatmul.mubr.f32.vlgmr.msra.gmra.mrb[48].mxu0 %v1553_v39 }
 0x920   :  { %v1643_v49 = vpop.f32.mrb[48].mxu0 }
 0x921   :  { %v1644_v50 = vadd.f32 %v1725_v47, %v1643_v49  ;;  %v1777_v51 = vpop.f32.mrb[49].mxu0 }
 0x923   :  { %1647 = vst [vmem:[%s2760_s6] sm:$0xff] %v1644_v50 }
 0x924   :  { %1652 = vsyncpa [#allocation4], 1 }
 0x925   :  { %1653 = vsyncpa [#allocation6], 1 }

</bundles_post_ra>
